<compile_context>
chip_gen: v6e
topology: v6e:2x2x1
jax: 0.10.0
libtpu: 0.0.40
codegen_flags: <defaults>
</compile_context>

<pallas_src>
import functools

import jax
import jax.numpy as jnp
from jax.experimental import pallas as pl
from jax.experimental.pallas import tpu as pltpu


def _sepconv_kernel(x_ref, wdw_ref, bdw_ref, wpw_ref, bpw_ref, o_ref, xpad_ref,
                    *, H, W, H_out, W_out, KH, KW, pad, dil, C_in, C_out):
    # x_ref   : (1, C_in, H, W)            VMEM, one batch element (NCHW)
    # wdw_ref : (C_in, KH*KW)   f32        SMEM depthwise taps
    # bdw_ref : (C_in,)         f32        SMEM depthwise bias
    # wpw_ref : (C_out, C_in)   f32        SMEM pointwise (1x1) weights
    # bpw_ref : (C_out,)        f32        SMEM pointwise bias
    # o_ref   : (1, C_out, H_out, W_out)   VMEM output block
    # xpad_ref: (H + 2*pad, W + 2*pad) f32 VMEM scratch: zero-padded channel image

    # Zero the pad border once per grid step; only the interior is rewritten per
    # channel below, so the border stays zero for every channel.
    xpad_ref[...] = jnp.zeros_like(xpad_ref)

    # Pointwise accumulators start at the pointwise bias (no zeros pass).
    out_acc = [jnp.full((H_out, W_out), bpw_ref[co], dtype=jnp.float32)
               for co in range(C_out)]

    # Static loop over input channels (C_in is small for this module config).
    # TODO(synk): for large channel counts the pointwise contraction should move to
    # the MXU (lane-dense C / (H*W, C_in) x (C_in, C_out) matmul) instead of the
    # scalar-broadcast VPU loop used here.
    for ci in range(C_in):
        # In-kernel zero padding: stage this channel's image into the padded scratch.
        xpad_ref[pad:pad + H, pad:pad + W] = x_ref[0, ci].astype(jnp.float32)

        # Depthwise accumulator starts at the depthwise bias (no zeros/bias passes).
        acc = jnp.full((H_out, W_out), bdw_ref[ci], dtype=jnp.float32)
        for kh in range(KH):
            # Load the row band once per kh; reuse it for the KW lane shifts.
            rows = xpad_ref[kh * dil: kh * dil + H_out, :]          # (H_out, Wp)
            for kw in range(KW):
                win = rows[:, kw * dil: kw * dil + W_out]           # in-register shift
                acc = acc + win * wdw_ref[ci, kh * KW + kw]         # scalar broadcast

        # Fused pointwise 1x1: out[co] += dw[ci] * wpw[co, ci]  (scalar from SMEM).
        for co in range(C_out):
            out_acc[co] = out_acc[co] + acc * wpw_ref[co, ci]

    for co in range(C_out):
        o_ref[0, co] = out_acc[co].astype(o_ref.dtype)


def separable_conv2d(x, w_dw, b_dw, w_pw, b_pw, *, padding=1, dilation=1):
    """Fused SeparableConv2D forward (stride=1).

    x    : (N, C_in, H, W)        NCHW input
    w_dw : (C_in, 1, KH, KW)      depthwise weights (PyTorch layout, groups=C_in)
    b_dw : (C_in,)                depthwise bias
    w_pw : (C_out, C_in, 1, 1)    pointwise 1x1 weights
    b_pw : (C_out,)               pointwise bias
    returns (N, C_out, H_out, W_out) in NCHW.
    """
    # TODO(synk): stride > 1 not implemented (module default stride=1 is used).
    N, C_in, H, W = x.shape
    KH, KW = int(w_dw.shape[2]), int(w_dw.shape[3])
    C_out = int(w_pw.shape[0])
    H_out = H + 2 * padding - dilation * (KH - 1)
    W_out = W + 2 * padding - dilation * (KW - 1)
    Hp, Wp = H + 2 * padding, W + 2 * padding

    # Small parameter tensors go to SMEM as flat f32 tables (scalar reads in-kernel).
    wdw_flat = w_dw.reshape(C_in, KH * KW).astype(jnp.float32)
    wpw_2d = w_pw.reshape(C_out, C_in).astype(jnp.float32)
    bdw = b_dw.astype(jnp.float32)
    bpw = b_pw.astype(jnp.float32)

    kernel = functools.partial(
        _sepconv_kernel, H=H, W=W, H_out=H_out, W_out=W_out, KH=KH, KW=KW,
        pad=padding, dil=dilation, C_in=C_in, C_out=C_out)

    itemsize = jnp.dtype(x.dtype).itemsize
    flops = (2 * N * H_out * W_out * C_in * KH * KW          # depthwise
             + 2 * N * H_out * W_out * C_in * C_out)          # pointwise
    bytes_accessed = (N * C_in * H * W * itemsize
                      + N * C_out * H_out * W_out * itemsize
                      + (C_in * KH * KW + C_out * C_in + C_in + C_out) * 4)

    # TODO(synk): for large feature maps, add an H-strip grid axis (with halo rows)
    # to bound VMEM on v7x and feed both TensorCores; whole-image blocks are fine at
    # these hourglass head sizes.
    out = pl.pallas_call(
        kernel,
        out_shape=jax.ShapeDtypeStruct((N, C_out, H_out, W_out), x.dtype),
        grid_spec=pltpu.PrefetchScalarGridSpec(
            num_scalar_prefetch=0,
            grid=(N,),
            in_specs=[
                pl.BlockSpec((1, C_in, H, W), lambda n: (n, 0, 0, 0)),
                pl.BlockSpec(memory_space=pltpu.MemorySpace.SMEM),   # depthwise taps
                pl.BlockSpec(memory_space=pltpu.MemorySpace.SMEM),   # depthwise bias
                pl.BlockSpec(memory_space=pltpu.MemorySpace.SMEM),   # pointwise weights
                pl.BlockSpec(memory_space=pltpu.MemorySpace.SMEM),   # pointwise bias
            ],
            out_specs=pl.BlockSpec((1, C_out, H_out, W_out), lambda n: (n, 0, 0, 0)),
            scratch_shapes=[pltpu.VMEM((Hp, Wp), jnp.float32)],
        ),
        compiler_params=pltpu.CompilerParams(
            dimension_semantics=("parallel",),
            vmem_limit_bytes=16 * 1024 * 1024,
        ),
        cost_estimate=pl.CostEstimate(
            flops=flops, transcendentals=0, bytes_accessed=bytes_accessed),
    )(x, wdw_flat, bdw, wpw_2d, bpw)

    return out


def _reference(x, w_dw, b_dw, w_pw, b_pw, *, padding=1, dilation=1):
    # Pure-JAX reference: depthwise grouped conv + 1x1 pointwise conv.
    C_in = x.shape[1]
    dw = jax.lax.conv_general_dilated(
        x, w_dw,
        window_strides=(1, 1),
        padding=((padding, padding), (padding, padding)),
        rhs_dilation=(dilation, dilation),
        dimension_numbers=("NCHW", "OIHW", "NCHW"),
        feature_group_count=C_in,
    ) + b_dw.reshape(1, -1, 1, 1)
    pw = jax.lax.conv_general_dilated(
        dw, w_pw,
        window_strides=(1, 1),
        padding="VALID",
        dimension_numbers=("NCHW", "OIHW", "NCHW"),
    ) + b_pw.reshape(1, -1, 1, 1)
    return pw


if __name__ == "__main__":
    key = jax.random.PRNGKey(0)
    kx, k1, k2, k3, k4 = jax.random.split(key, 5)

    N, C_in, C_out, H, W = 2, 4, 8, 16, 16
    KH = KW = 3
    padding, dilation = 1, 1

    x = jax.random.normal(kx, (N, C_in, H, W), dtype=jnp.float32)
    # Deterministic synthetic params matching nn.Conv2d shapes.
    w_dw = jax.random.normal(k1, (C_in, 1, KH, KW), dtype=jnp.float32) * 0.1
    b_dw = jax.random.normal(k2, (C_in,), dtype=jnp.float32) * 0.1
    w_pw = jax.random.normal(k3, (C_out, C_in, 1, 1), dtype=jnp.float32) * 0.1
    b_pw = jax.random.normal(k4, (C_out,), dtype=jnp.float32) * 0.1

    out = separable_conv2d(x, w_dw, b_dw, w_pw, b_pw,
                           padding=padding, dilation=dilation)
    out = jax.block_until_ready(out)

    ref = _reference(x, w_dw, b_dw, w_pw, b_pw, padding=padding, dilation=dilation)
    assert out.shape == ref.shape == (N, C_out, H, W)
    assert jnp.allclose(out, ref, atol=1e-4, rtol=1e-4)

    print("KERNEL_OK")
</pallas_src>

<mosaic_0001>
module attributes {stable_mosaic.version = 11 : i64} {
  func.func @_sepconv_kernel(%arg0: i32, %arg1: memref<1x4x16x16xf32, #tpu.memory_space<vmem>>, %arg2: memref<4x9xf32, #tpu.memory_space<smem>>, %arg3: memref<4xf32, #tpu.memory_space<smem>>, %arg4: memref<8x4xf32, #tpu.memory_space<smem>>, %arg5: memref<8xf32, #tpu.memory_space<smem>>, %arg6: memref<1x8x16x16xf32, #tpu.memory_space<vmem>>, %arg7: memref<18x18xf32, #tpu.memory_space<vmem>>) attributes {dimension_semantics = [#tpu.dimension_semantics<parallel>], iteration_bounds = array<i64: 2>, scalar_prefetch = 0 : i64, scratch_operands = 1 : i64, tpu.core_type = #tpu.core_type<tc>, window_params = [{transform_indices = @transform_0, window_bounds = array<i64: 1, 4, 16, 16>}, {transform_indices = @transform_1, window_bounds = array<i64: 4, 9>}, {transform_indices = @transform_2, window_bounds = array<i64: 4>}, {transform_indices = @transform_3, window_bounds = array<i64: 8, 4>}, {transform_indices = @transform_4, window_bounds = array<i64: 8>}, {transform_indices = @transform_5, window_bounds = array<i64: 1, 8, 16, 16>}]} {
    %cst = arith.constant 0.000000e+00 : f32
    %0 = vector.broadcast %cst : f32 to vector<18x18xf32>
    %c0 = arith.constant 0 : index
    %c0_0 = arith.constant 0 : index
    %1 = vector.load %arg7[%c0, %c0_0] : memref<18x18xf32, #tpu.memory_space<vmem>>, vector<18x18xf32>
    tpu.vector_store %arg7[%c0, %c0_0], %0 {strides = array<i32>} : memref<18x18xf32, #tpu.memory_space<vmem>>, vector<18x18xf32>,
    %c0_1 = arith.constant 0 : index
    %2 = memref.load %arg5[%c0_1] : memref<8xf32, #tpu.memory_space<smem>>
    %3 = vector.broadcast %2 : f32 to vector<16x16xf32>
    %c1 = arith.constant 1 : index
    %4 = memref.load %arg5[%c1] : memref<8xf32, #tpu.memory_space<smem>>
    %5 = vector.broadcast %4 : f32 to vector<16x16xf32>
    %c2 = arith.constant 2 : index
    %6 = memref.load %arg5[%c2] : memref<8xf32, #tpu.memory_space<smem>>
    %7 = vector.broadcast %6 : f32 to vector<16x16xf32>
    %c3 = arith.constant 3 : index
    %8 = memref.load %arg5[%c3] : memref<8xf32, #tpu.memory_space<smem>>
    %9 = vector.broadcast %8 : f32 to vector<16x16xf32>
    %c4 = arith.constant 4 : index
    %10 = memref.load %arg5[%c4] : memref<8xf32, #tpu.memory_space<smem>>
    %11 = vector.broadcast %10 : f32 to vector<16x16xf32>
    %c5 = arith.constant 5 : index
    %12 = memref.load %arg5[%c5] : memref<8xf32, #tpu.memory_space<smem>>
    %13 = vector.broadcast %12 : f32 to vector<16x16xf32>
    %c6 = arith.constant 6 : index
    %14 = memref.load %arg5[%c6] : memref<8xf32, #tpu.memory_space<smem>>
    %15 = vector.broadcast %14 : f32 to vector<16x16xf32>
    %c7 = arith.constant 7 : index
    %16 = memref.load %arg5[%c7] : memref<8xf32, #tpu.memory_space<smem>>
    %17 = vector.broadcast %16 : f32 to vector<16x16xf32>
    %c0_2 = arith.constant 0 : index
    %c0_3 = arith.constant 0 : index
    %c0_4 = arith.constant 0 : index
    %c0_5 = arith.constant 0 : index
    %18 = vector.load %arg1[%c0_2, %c0_3, %c0_4, %c0_5] : memref<1x4x16x16xf32, #tpu.memory_space<vmem>>, vector<1x1x16x16xf32>
    %19 = vector.shape_cast %18 : vector<1x1x16x16xf32> to vector<16x16xf32>
    %c1_6 = arith.constant 1 : index
    %c1_7 = arith.constant 1 : index
    %20 = vector.load %arg7[%c1_6, %c1_7] : memref<18x18xf32, #tpu.memory_space<vmem>>, vector<16x16xf32>
    tpu.vector_store %arg7[%c1_6, %c1_7], %19 {strides = array<i32>} : memref<18x18xf32, #tpu.memory_space<vmem>>, vector<16x16xf32>,
    %c0_8 = arith.constant 0 : index
    %21 = memref.load %arg3[%c0_8] : memref<4xf32, #tpu.memory_space<smem>>
    %22 = vector.broadcast %21 : f32 to vector<16x16xf32>
    %c0_9 = arith.constant 0 : index
    %c0_10 = arith.constant 0 : index
    %23 = vector.load %arg7[%c0_9, %c0_10] : memref<18x18xf32, #tpu.memory_space<vmem>>, vector<16x18xf32>
    %24 = vector.extract_strided_slice %23 {offsets = [0, 0], sizes = [16, 16], strides = [1, 1]} : vector<16x18xf32> to vector<16x16xf32>
    %c0_11 = arith.constant 0 : index
    %c0_12 = arith.constant 0 : index
    %25 = memref.load %arg2[%c0_11, %c0_12] : memref<4x9xf32, #tpu.memory_space<smem>>
    %26 = vector.broadcast %25 : f32 to vector<16x16xf32>
    %27 = arith.mulf %24, %26 : vector<16x16xf32>
    %28 = arith.addf %22, %27 : vector<16x16xf32>
    %29 = vector.extract_strided_slice %23 {offsets = [0, 1], sizes = [16, 16], strides = [1, 1]} : vector<16x18xf32> to vector<16x16xf32>
    %c0_13 = arith.constant 0 : index
    %c1_14 = arith.constant 1 : index
    %30 = memref.load %arg2[%c0_13, %c1_14] : memref<4x9xf32, #tpu.memory_space<smem>>
    %31 = vector.broadcast %30 : f32 to vector<16x16xf32>
    %32 = arith.mulf %29, %31 : vector<16x16xf32>
    %33 = arith.addf %28, %32 : vector<16x16xf32>
    %34 = vector.extract_strided_slice %23 {offsets = [0, 2], sizes = [16, 16], strides = [1, 1]} : vector<16x18xf32> to vector<16x16xf32>
    %c0_15 = arith.constant 0 : index
    %c2_16 = arith.constant 2 : index
    %35 = memref.load %arg2[%c0_15, %c2_16] : memref<4x9xf32, #tpu.memory_space<smem>>
    %36 = vector.broadcast %35 : f32 to vector<16x16xf32>
    %37 = arith.mulf %34, %36 : vector<16x16xf32>
    %38 = arith.addf %33, %37 : vector<16x16xf32>
    %c1_17 = arith.constant 1 : index
    %c0_18 = arith.constant 0 : index
    %39 = vector.load %arg7[%c1_17, %c0_18] : memref<18x18xf32, #tpu.memory_space<vmem>>, vector<16x18xf32>
    %40 = vector.extract_strided_slice %39 {offsets = [0, 0], sizes = [16, 16], strides = [1, 1]} : vector<16x18xf32> to vector<16x16xf32>
    %c0_19 = arith.constant 0 : index
    %c3_20 = arith.constant 3 : index
    %41 = memref.load %arg2[%c0_19, %c3_20] : memref<4x9xf32, #tpu.memory_space<smem>>
    %42 = vector.broadcast %41 : f32 to vector<16x16xf32>
    %43 = arith.mulf %40, %42 : vector<16x16xf32>
    %44 = arith.addf %38, %43 : vector<16x16xf32>
    %45 = vector.extract_strided_slice %39 {offsets = [0, 1], sizes = [16, 16], strides = [1, 1]} : vector<16x18xf32> to vector<16x16xf32>
    %c0_21 = arith.constant 0 : index
    %c4_22 = arith.constant 4 : index
    %46 = memref.load %arg2[%c0_21, %c4_22] : memref<4x9xf32, #tpu.memory_space<smem>>
    %47 = vector.broadcast %46 : f32 to vector<16x16xf32>
    %48 = arith.mulf %45, %47 : vector<16x16xf32>
    %49 = arith.addf %44, %48 : vector<16x16xf32>
    %50 = vector.extract_strided_slice %39 {offsets = [0, 2], sizes = [16, 16], strides = [1, 1]} : vector<16x18xf32> to vector<16x16xf32>
    %c0_23 = arith.constant 0 : index
    %c5_24 = arith.constant 5 : index
    %51 = memref.load %arg2[%c0_23, %c5_24] : memref<4x9xf32, #tpu.memory_space<smem>>
    %52 = vector.broadcast %51 : f32 to vector<16x16xf32>
    %53 = arith.mulf %50, %52 : vector<16x16xf32>
    %54 = arith.addf %49, %53 : vector<16x16xf32>
    %c2_25 = arith.constant 2 : index
    %c0_26 = arith.constant 0 : index
    %55 = vector.load %arg7[%c2_25, %c0_26] : memref<18x18xf32, #tpu.memory_space<vmem>>, vector<16x18xf32>
    %56 = vector.extract_strided_slice %55 {offsets = [0, 0], sizes = [16, 16], strides = [1, 1]} : vector<16x18xf32> to vector<16x16xf32>
    %c0_27 = arith.constant 0 : index
    %c6_28 = arith.constant 6 : index
    %57 = memref.load %arg2[%c0_27, %c6_28] : memref<4x9xf32, #tpu.memory_space<smem>>
    %58 = vector.broadcast %57 : f32 to vector<16x16xf32>
    %59 = arith.mulf %56, %58 : vector<16x16xf32>
    %60 = arith.addf %54, %59 : vector<16x16xf32>
    %61 = vector.extract_strided_slice %55 {offsets = [0, 1], sizes = [16, 16], strides = [1, 1]} : vector<16x18xf32> to vector<16x16xf32>
    %c0_29 = arith.constant 0 : index
    %c7_30 = arith.constant 7 : index
    %62 = memref.load %arg2[%c0_29, %c7_30] : memref<4x9xf32, #tpu.memory_space<smem>>
    %63 = vector.broadcast %62 : f32 to vector<16x16xf32>
    %64 = arith.mulf %61, %63 : vector<16x16xf32>
    %65 = arith.addf %60, %64 : vector<16x16xf32>
    %66 = vector.extract_strided_slice %55 {offsets = [0, 2], sizes = [16, 16], strides = [1, 1]} : vector<16x18xf32> to vector<16x16xf32>
    %c0_31 = arith.constant 0 : index
    %c8 = arith.constant 8 : index
    %67 = memref.load %arg2[%c0_31, %c8] : memref<4x9xf32, #tpu.memory_space<smem>>
    %68 = vector.broadcast %67 : f32 to vector<16x16xf32>
    %69 = arith.mulf %66, %68 : vector<16x16xf32>
    %70 = arith.addf %65, %69 : vector<16x16xf32>
    %c0_32 = arith.constant 0 : index
    %c0_33 = arith.constant 0 : index
    %71 = memref.load %arg4[%c0_32, %c0_33] : memref<8x4xf32, #tpu.memory_space<smem>>
    %72 = vector.broadcast %71 : f32 to vector<16x16xf32>
    %73 = arith.mulf %70, %72 : vector<16x16xf32>
    %74 = arith.addf %3, %73 : vector<16x16xf32>
    %c1_34 = arith.constant 1 : index
    %c0_35 = arith.constant 0 : index
    %75 = memref.load %arg4[%c1_34, %c0_35] : memref<8x4xf32, #tpu.memory_space<smem>>
    %76 = vector.broadcast %75 : f32 to vector<16x16xf32>
    %77 = arith.mulf %70, %76 : vector<16x16xf32>
    %78 = arith.addf %5, %77 : vector<16x16xf32>
    %c2_36 = arith.constant 2 : index
    %c0_37 = arith.constant 0 : index
    %79 = memref.load %arg4[%c2_36, %c0_37] : memref<8x4xf32, #tpu.memory_space<smem>>
    %80 = vector.broadcast %79 : f32 to vector<16x16xf32>
    %81 = arith.mulf %70, %80 : vector<16x16xf32>
    %82 = arith.addf %7, %81 : vector<16x16xf32>
    %c3_38 = arith.constant 3 : index
    %c0_39 = arith.constant 0 : index
    %83 = memref.load %arg4[%c3_38, %c0_39] : memref<8x4xf32, #tpu.memory_space<smem>>
    %84 = vector.broadcast %83 : f32 to vector<16x16xf32>
    %85 = arith.mulf %70, %84 : vector<16x16xf32>
    %86 = arith.addf %9, %85 : vector<16x16xf32>
    %c4_40 = arith.constant 4 : index
    %c0_41 = arith.constant 0 : index
    %87 = memref.load %arg4[%c4_40, %c0_41] : memref<8x4xf32, #tpu.memory_space<smem>>
    %88 = vector.broadcast %87 : f32 to vector<16x16xf32>
    %89 = arith.mulf %70, %88 : vector<16x16xf32>
    %90 = arith.addf %11, %89 : vector<16x16xf32>
    %c5_42 = arith.constant 5 : index
    %c0_43 = arith.constant 0 : index
    %91 = memref.load %arg4[%c5_42, %c0_43] : memref<8x4xf32, #tpu.memory_space<smem>>
    %92 = vector.broadcast %91 : f32 to vector<16x16xf32>
    %93 = arith.mulf %70, %92 : vector<16x16xf32>
    %94 = arith.addf %13, %93 : vector<16x16xf32>
    %c6_44 = arith.constant 6 : index
    %c0_45 = arith.constant 0 : index
    %95 = memref.load %arg4[%c6_44, %c0_45] : memref<8x4xf32, #tpu.memory_space<smem>>
    %96 = vector.broadcast %95 : f32 to vector<16x16xf32>
    %97 = arith.mulf %70, %96 : vector<16x16xf32>
    %98 = arith.addf %15, %97 : vector<16x16xf32>
    %c7_46 = arith.constant 7 : index
    %c0_47 = arith.constant 0 : index
    %99 = memref.load %arg4[%c7_46, %c0_47] : memref<8x4xf32, #tpu.memory_space<smem>>
    %100 = vector.broadcast %99 : f32 to vector<16x16xf32>
    %101 = arith.mulf %70, %100 : vector<16x16xf32>
    %102 = arith.addf %17, %101 : vector<16x16xf32>
    %c0_48 = arith.constant 0 : index
    %c1_49 = arith.constant 1 : index
    %c0_50 = arith.constant 0 : index
    %c0_51 = arith.constant 0 : index
    %103 = vector.load %arg1[%c0_48, %c1_49, %c0_50, %c0_51] : memref<1x4x16x16xf32, #tpu.memory_space<vmem>>, vector<1x1x16x16xf32>
    %104 = vector.shape_cast %103 : vector<1x1x16x16xf32> to vector<16x16xf32>
    %c1_52 = arith.constant 1 : index
    %c1_53 = arith.constant 1 : index
    %105 = vector.load %arg7[%c1_52, %c1_53] : memref<18x18xf32, #tpu.memory_space<vmem>>, vector<16x16xf32>
    tpu.vector_store %arg7[%c1_52, %c1_53], %104 {strides = array<i32>} : memref<18x18xf32, #tpu.memory_space<vmem>>, vector<16x16xf32>,
    %c1_54 = arith.constant 1 : index
    %106 = memref.load %arg3[%c1_54] : memref<4xf32, #tpu.memory_space<smem>>
    %107 = vector.broadcast %106 : f32 to vector<16x16xf32>
    %c0_55 = arith.constant 0 : index
    %c0_56 = arith.constant 0 : index
    %108 = vector.load %arg7[%c0_55, %c0_56] : memref<18x18xf32, #tpu.memory_space<vmem>>, vector<16x18xf32>
    %109 = vector.extract_strided_slice %108 {offsets = [0, 0], sizes = [16, 16], strides = [1, 1]} : vector<16x18xf32> to vector<16x16xf32>
    %c1_57 = arith.constant 1 : index
    %c0_58 = arith.constant 0 : index
    %110 = memref.load %arg2[%c1_57, %c0_58] : memref<4x9xf32, #tpu.memory_space<smem>>
    %111 = vector.broadcast %110 : f32 to vector<16x16xf32>
    %112 = arith.mulf %109, %111 : vector<16x16xf32>
    %113 = arith.addf %107, %112 : vector<16x16xf32>
    %114 = vector.extract_strided_slice %108 {offsets = [0, 1], sizes = [16, 16], strides = [1, 1]} : vector<16x18xf32> to vector<16x16xf32>
    %c1_59 = arith.constant 1 : index
    %c1_60 = arith.constant 1 : index
    %115 = memref.load %arg2[%c1_59, %c1_60] : memref<4x9xf32, #tpu.memory_space<smem>>
    %116 = vector.broadcast %115 : f32 to vector<16x16xf32>
    %117 = arith.mulf %114, %116 : vector<16x16xf32>
    %118 = arith.addf %113, %117 : vector<16x16xf32>
    %119 = vector.extract_strided_slice %108 {offsets = [0, 2], sizes = [16, 16], strides = [1, 1]} : vector<16x18xf32> to vector<16x16xf32>
    %c1_61 = arith.constant 1 : index
    %c2_62 = arith.constant 2 : index
    %120 = memref.load %arg2[%c1_61, %c2_62] : memref<4x9xf32, #tpu.memory_space<smem>>
    %121 = vector.broadcast %120 : f32 to vector<16x16xf32>
    %122 = arith.mulf %119, %121 : vector<16x16xf32>
    %123 = arith.addf %118, %122 : vector<16x16xf32>
    %c1_63 = arith.constant 1 : index
    %c0_64 = arith.constant 0 : index
    %124 = vector.load %arg7[%c1_63, %c0_64] : memref<18x18xf32, #tpu.memory_space<vmem>>, vector<16x18xf32>
    %125 = vector.extract_strided_slice %124 {offsets = [0, 0], sizes = [16, 16], strides = [1, 1]} : vector<16x18xf32> to vector<16x16xf32>
    %c1_65 = arith.constant 1 : index
    %c3_66 = arith.constant 3 : index
    %126 = memref.load %arg2[%c1_65, %c3_66] : memref<4x9xf32, #tpu.memory_space<smem>>
    %127 = vector.broadcast %126 : f32 to vector<16x16xf32>
    %128 = arith.mulf %125, %127 : vector<16x16xf32>
    %129 = arith.addf %123, %128 : vector<16x16xf32>
    %130 = vector.extract_strided_slice %124 {offsets = [0, 1], sizes = [16, 16], strides = [1, 1]} : vector<16x18xf32> to vector<16x16xf32>
    %c1_67 = arith.constant 1 : index
    %c4_68 = arith.constant 4 : index
    %131 = memref.load %arg2[%c1_67, %c4_68] : memref<4x9xf32, #tpu.memory_space<smem>>
    %132 = vector.broadcast %131 : f32 to vector<16x16xf32>
    %133 = arith.mulf %130, %132 : vector<16x16xf32>
    %134 = arith.addf %129, %133 : vector<16x16xf32>
    %135 = vector.extract_strided_slice %124 {offsets = [0, 2], sizes = [16, 16], strides = [1, 1]} : vector<16x18xf32> to vector<16x16xf32>
    %c1_69 = arith.constant 1 : index
    %c5_70 = arith.constant 5 : index
    %136 = memref.load %arg2[%c1_69, %c5_70] : memref<4x9xf32, #tpu.memory_space<smem>>
    %137 = vector.broadcast %136 : f32 to vector<16x16xf32>
    %138 = arith.mulf %135, %137 : vector<16x16xf32>
    %139 = arith.addf %134, %138 : vector<16x16xf32>
    %c2_71 = arith.constant 2 : index
    %c0_72 = arith.constant 0 : index
    %140 = vector.load %arg7[%c2_71, %c0_72] : memref<18x18xf32, #tpu.memory_space<vmem>>, vector<16x18xf32>
    %141 = vector.extract_strided_slice %140 {offsets = [0, 0], sizes = [16, 16], strides = [1, 1]} : vector<16x18xf32> to vector<16x16xf32>
    %c1_73 = arith.constant 1 : index
    %c6_74 = arith.constant 6 : index
    %142 = memref.load %arg2[%c1_73, %c6_74] : memref<4x9xf32, #tpu.memory_space<smem>>
    %143 = vector.broadcast %142 : f32 to vector<16x16xf32>
    %144 = arith.mulf %141, %143 : vector<16x16xf32>
    %145 = arith.addf %139, %144 : vector<16x16xf32>
    %146 = vector.extract_strided_slice %140 {offsets = [0, 1], sizes = [16, 16], strides = [1, 1]} : vector<16x18xf32> to vector<16x16xf32>
    %c1_75 = arith.constant 1 : index
    %c7_76 = arith.constant 7 : index
    %147 = memref.load %arg2[%c1_75, %c7_76] : memref<4x9xf32, #tpu.memory_space<smem>>
    %148 = vector.broadcast %147 : f32 to vector<16x16xf32>
    %149 = arith.mulf %146, %148 : vector<16x16xf32>
    %150 = arith.addf %145, %149 : vector<16x16xf32>
    %151 = vector.extract_strided_slice %140 {offsets = [0, 2], sizes = [16, 16], strides = [1, 1]} : vector<16x18xf32> to vector<16x16xf32>
    %c1_77 = arith.constant 1 : index
    %c8_78 = arith.constant 8 : index
    %152 = memref.load %arg2[%c1_77, %c8_78] : memref<4x9xf32, #tpu.memory_space<smem>>
    %153 = vector.broadcast %152 : f32 to vector<16x16xf32>
    %154 = arith.mulf %151, %153 : vector<16x16xf32>
    %155 = arith.addf %150, %154 : vector<16x16xf32>
    %c0_79 = arith.constant 0 : index
    %c1_80 = arith.constant 1 : index
    %156 = memref.load %arg4[%c0_79, %c1_80] : memref<8x4xf32, #tpu.memory_space<smem>>
    %157 = vector.broadcast %156 : f32 to vector<16x16xf32>
    %158 = arith.mulf %155, %157 : vector<16x16xf32>
    %159 = arith.addf %74, %158 : vector<16x16xf32>
    %c1_81 = arith.constant 1 : index
    %c1_82 = arith.constant 1 : index
    %160 = memref.load %arg4[%c1_81, %c1_82] : memref<8x4xf32, #tpu.memory_space<smem>>
    %161 = vector.broadcast %160 : f32 to vector<16x16xf32>
    %162 = arith.mulf %155, %161 : vector<16x16xf32>
    %163 = arith.addf %78, %162 : vector<16x16xf32>
    %c2_83 = arith.constant 2 : index
    %c1_84 = arith.constant 1 : index
    %164 = memref.load %arg4[%c2_83, %c1_84] : memref<8x4xf32, #tpu.memory_space<smem>>
    %165 = vector.broadcast %164 : f32 to vector<16x16xf32>
    %166 = arith.mulf %155, %165 : vector<16x16xf32>
    %167 = arith.addf %82, %166 : vector<16x16xf32>
    %c3_85 = arith.constant 3 : index
    %c1_86 = arith.constant 1 : index
    %168 = memref.load %arg4[%c3_85, %c1_86] : memref<8x4xf32, #tpu.memory_space<smem>>
    %169 = vector.broadcast %168 : f32 to vector<16x16xf32>
    %170 = arith.mulf %155, %169 : vector<16x16xf32>
    %171 = arith.addf %86, %170 : vector<16x16xf32>
    %c4_87 = arith.constant 4 : index
    %c1_88 = arith.constant 1 : index
    %172 = memref.load %arg4[%c4_87, %c1_88] : memref<8x4xf32, #tpu.memory_space<smem>>
    %173 = vector.broadcast %172 : f32 to vector<16x16xf32>
    %174 = arith.mulf %155, %173 : vector<16x16xf32>
    %175 = arith.addf %90, %174 : vector<16x16xf32>
    %c5_89 = arith.constant 5 : index
    %c1_90 = arith.constant 1 : index
    %176 = memref.load %arg4[%c5_89, %c1_90] : memref<8x4xf32, #tpu.memory_space<smem>>
    %177 = vector.broadcast %176 : f32 to vector<16x16xf32>
    %178 = arith.mulf %155, %177 : vector<16x16xf32>
    %179 = arith.addf %94, %178 : vector<16x16xf32>
    %c6_91 = arith.constant 6 : index
    %c1_92 = arith.constant 1 : index
    %180 = memref.load %arg4[%c6_91, %c1_92] : memref<8x4xf32, #tpu.memory_space<smem>>
    %181 = vector.broadcast %180 : f32 to vector<16x16xf32>
    %182 = arith.mulf %155, %181 : vector<16x16xf32>
    %183 = arith.addf %98, %182 : vector<16x16xf32>
    %c7_93 = arith.constant 7 : index
    %c1_94 = arith.constant 1 : index
    %184 = memref.load %arg4[%c7_93, %c1_94] : memref<8x4xf32, #tpu.memory_space<smem>>
    %185 = vector.broadcast %184 : f32 to vector<16x16xf32>
    %186 = arith.mulf %155, %185 : vector<16x16xf32>
    %187 = arith.addf %102, %186 : vector<16x16xf32>
    %c0_95 = arith.constant 0 : index
    %c2_96 = arith.constant 2 : index
    %c0_97 = arith.constant 0 : index
    %c0_98 = arith.constant 0 : index
    %188 = vector.load %arg1[%c0_95, %c2_96, %c0_97, %c0_98] : memref<1x4x16x16xf32, #tpu.memory_space<vmem>>, vector<1x1x16x16xf32>
    %189 = vector.shape_cast %188 : vector<1x1x16x16xf32> to vector<16x16xf32>
    %c1_99 = arith.constant 1 : index
    %c1_100 = arith.constant 1 : index
    %190 = vector.load %arg7[%c1_99, %c1_100] : memref<18x18xf32, #tpu.memory_space<vmem>>, vector<16x16xf32>
    tpu.vector_store %arg7[%c1_99, %c1_100], %189 {strides = array<i32>} : memref<18x18xf32, #tpu.memory_space<vmem>>, vector<16x16xf32>,
    %c2_101 = arith.constant 2 : index
    %191 = memref.load %arg3[%c2_101] : memref<4xf32, #tpu.memory_space<smem>>
    %192 = vector.broadcast %191 : f32 to vector<16x16xf32>
    %c0_102 = arith.constant 0 : index
    %c0_103 = arith.constant 0 : index
    %193 = vector.load %arg7[%c0_102, %c0_103] : memref<18x18xf32, #tpu.memory_space<vmem>>, vector<16x18xf32>
    %194 = vector.extract_strided_slice %193 {offsets = [0, 0], sizes = [16, 16], strides = [1, 1]} : vector<16x18xf32> to vector<16x16xf32>
    %c2_104 = arith.constant 2 : index
    %c0_105 = arith.constant 0 : index
    %195 = memref.load %arg2[%c2_104, %c0_105] : memref<4x9xf32, #tpu.memory_space<smem>>
    %196 = vector.broadcast %195 : f32 to vector<16x16xf32>
    %197 = arith.mulf %194, %196 : vector<16x16xf32>
    %198 = arith.addf %192, %197 : vector<16x16xf32>
    %199 = vector.extract_strided_slice %193 {offsets = [0, 1], sizes = [16, 16], strides = [1, 1]} : vector<16x18xf32> to vector<16x16xf32>
    %c2_106 = arith.constant 2 : index
    %c1_107 = arith.constant 1 : index
    %200 = memref.load %arg2[%c2_106, %c1_107] : memref<4x9xf32, #tpu.memory_space<smem>>
    %201 = vector.broadcast %200 : f32 to vector<16x16xf32>
    %202 = arith.mulf %199, %201 : vector<16x16xf32>
    %203 = arith.addf %198, %202 : vector<16x16xf32>
    %204 = vector.extract_strided_slice %193 {offsets = [0, 2], sizes = [16, 16], strides = [1, 1]} : vector<16x18xf32> to vector<16x16xf32>
    %c2_108 = arith.constant 2 : index
    %c2_109 = arith.constant 2 : index
    %205 = memref.load %arg2[%c2_108, %c2_109] : memref<4x9xf32, #tpu.memory_space<smem>>
    %206 = vector.broadcast %205 : f32 to vector<16x16xf32>
    %207 = arith.mulf %204, %206 : vector<16x16xf32>
    %208 = arith.addf %203, %207 : vector<16x16xf32>
    %c1_110 = arith.constant 1 : index
    %c0_111 = arith.constant 0 : index
    %209 = vector.load %arg7[%c1_110, %c0_111] : memref<18x18xf32, #tpu.memory_space<vmem>>, vector<16x18xf32>
    %210 = vector.extract_strided_slice %209 {offsets = [0, 0], sizes = [16, 16], strides = [1, 1]} : vector<16x18xf32> to vector<16x16xf32>
    %c2_112 = arith.constant 2 : index
    %c3_113 = arith.constant 3 : index
    %211 = memref.load %arg2[%c2_112, %c3_113] : memref<4x9xf32, #tpu.memory_space<smem>>
    %212 = vector.broadcast %211 : f32 to vector<16x16xf32>
    %213 = arith.mulf %210, %212 : vector<16x16xf32>
    %214 = arith.addf %208, %213 : vector<16x16xf32>
    %215 = vector.extract_strided_slice %209 {offsets = [0, 1], sizes = [16, 16], strides = [1, 1]} : vector<16x18xf32> to vector<16x16xf32>
    %c2_114 = arith.constant 2 : index
    %c4_115 = arith.constant 4 : index
    %216 = memref.load %arg2[%c2_114, %c4_115] : memref<4x9xf32, #tpu.memory_space<smem>>
    %217 = vector.broadcast %216 : f32 to vector<16x16xf32>
    %218 = arith.mulf %215, %217 : vector<16x16xf32>
    %219 = arith.addf %214, %218 : vector<16x16xf32>
    %220 = vector.extract_strided_slice %209 {offsets = [0, 2], sizes = [16, 16], strides = [1, 1]} : vector<16x18xf32> to vector<16x16xf32>
    %c2_116 = arith.constant 2 : index
    %c5_117 = arith.constant 5 : index
    %221 = memref.load %arg2[%c2_116, %c5_117] : memref<4x9xf32, #tpu.memory_space<smem>>
    %222 = vector.broadcast %221 : f32 to vector<16x16xf32>
    %223 = arith.mulf %220, %222 : vector<16x16xf32>
    %224 = arith.addf %219, %223 : vector<16x16xf32>
    %c2_118 = arith.constant 2 : index
    %c0_119 = arith.constant 0 : index
    %225 = vector.load %arg7[%c2_118, %c0_119] : memref<18x18xf32, #tpu.memory_space<vmem>>, vector<16x18xf32>
    %226 = vector.extract_strided_slice %225 {offsets = [0, 0], sizes = [16, 16], strides = [1, 1]} : vector<16x18xf32> to vector<16x16xf32>
    %c2_120 = arith.constant 2 : index
    %c6_121 = arith.constant 6 : index
    %227 = memref.load %arg2[%c2_120, %c6_121] : memref<4x9xf32, #tpu.memory_space<smem>>
    %228 = vector.broadcast %227 : f32 to vector<16x16xf32>
    %229 = arith.mulf %226, %228 : vector<16x16xf32>
    %230 = arith.addf %224, %229 : vector<16x16xf32>
    %231 = vector.extract_strided_slice %225 {offsets = [0, 1], sizes = [16, 16], strides = [1, 1]} : vector<16x18xf32> to vector<16x16xf32>
    %c2_122 = arith.constant 2 : index
    %c7_123 = arith.constant 7 : index
    %232 = memref.load %arg2[%c2_122, %c7_123] : memref<4x9xf32, #tpu.memory_space<smem>>
    %233 = vector.broadcast %232 : f32 to vector<16x16xf32>
    %234 = arith.mulf %231, %233 : vector<16x16xf32>
    %235 = arith.addf %230, %234 : vector<16x16xf32>
    %236 = vector.extract_strided_slice %225 {offsets = [0, 2], sizes = [16, 16], strides = [1, 1]} : vector<16x18xf32> to vector<16x16xf32>
    %c2_124 = arith.constant 2 : index
    %c8_125 = arith.constant 8 : index
    %237 = memref.load %arg2[%c2_124, %c8_125] : memref<4x9xf32, #tpu.memory_space<smem>>
    %238 = vector.broadcast %237 : f32 to vector<16x16xf32>
    %239 = arith.mulf %236, %238 : vector<16x16xf32>
    %240 = arith.addf %235, %239 : vector<16x16xf32>
    %c0_126 = arith.constant 0 : index
    %c2_127 = arith.constant 2 : index
    %241 = memref.load %arg4[%c0_126, %c2_127] : memref<8x4xf32, #tpu.memory_space<smem>>
    %242 = vector.broadcast %241 : f32 to vector<16x16xf32>
    %243 = arith.mulf %240, %242 : vector<16x16xf32>
    %244 = arith.addf %159, %243 : vector<16x16xf32>
    %c1_128 = arith.constant 1 : index
    %c2_129 = arith.constant 2 : index
    %245 = memref.load %arg4[%c1_128, %c2_129] : memref<8x4xf32, #tpu.memory_space<smem>>
    %246 = vector.broadcast %245 : f32 to vector<16x16xf32>
    %247 = arith.mulf %240, %246 : vector<16x16xf32>
    %248 = arith.addf %163, %247 : vector<16x16xf32>
    %c2_130 = arith.constant 2 : index
    %c2_131 = arith.constant 2 : index
    %249 = memref.load %arg4[%c2_130, %c2_131] : memref<8x4xf32, #tpu.memory_space<smem>>
    %250 = vector.broadcast %249 : f32 to vector<16x16xf32>
    %251 = arith.mulf %240, %250 : vector<16x16xf32>
    %252 = arith.addf %167, %251 : vector<16x16xf32>
    %c3_132 = arith.constant 3 : index
    %c2_133 = arith.constant 2 : index
    %253 = memref.load %arg4[%c3_132, %c2_133] : memref<8x4xf32, #tpu.memory_space<smem>>
    %254 = vector.broadcast %253 : f32 to vector<16x16xf32>
    %255 = arith.mulf %240, %254 : vector<16x16xf32>
    %256 = arith.addf %171, %255 : vector<16x16xf32>
    %c4_134 = arith.constant 4 : index
    %c2_135 = arith.constant 2 : index
    %257 = memref.load %arg4[%c4_134, %c2_135] : memref<8x4xf32, #tpu.memory_space<smem>>
    %258 = vector.broadcast %257 : f32 to vector<16x16xf32>
    %259 = arith.mulf %240, %258 : vector<16x16xf32>
    %260 = arith.addf %175, %259 : vector<16x16xf32>
    %c5_136 = arith.constant 5 : index
    %c2_137 = arith.constant 2 : index
    %261 = memref.load %arg4[%c5_136, %c2_137] : memref<8x4xf32, #tpu.memory_space<smem>>
    %262 = vector.broadcast %261 : f32 to vector<16x16xf32>
    %263 = arith.mulf %240, %262 : vector<16x16xf32>
    %264 = arith.addf %179, %263 : vector<16x16xf32>
    %c6_138 = arith.constant 6 : index
    %c2_139 = arith.constant 2 : index
    %265 = memref.load %arg4[%c6_138, %c2_139] : memref<8x4xf32, #tpu.memory_space<smem>>
    %266 = vector.broadcast %265 : f32 to vector<16x16xf32>
    %267 = arith.mulf %240, %266 : vector<16x16xf32>
    %268 = arith.addf %183, %267 : vector<16x16xf32>
    %c7_140 = arith.constant 7 : index
    %c2_141 = arith.constant 2 : index
    %269 = memref.load %arg4[%c7_140, %c2_141] : memref<8x4xf32, #tpu.memory_space<smem>>
    %270 = vector.broadcast %269 : f32 to vector<16x16xf32>
    %271 = arith.mulf %240, %270 : vector<16x16xf32>
    %272 = arith.addf %187, %271 : vector<16x16xf32>
    %c0_142 = arith.constant 0 : index
    %c3_143 = arith.constant 3 : index
    %c0_144 = arith.constant 0 : index
    %c0_145 = arith.constant 0 : index
    %273 = vector.load %arg1[%c0_142, %c3_143, %c0_144, %c0_145] : memref<1x4x16x16xf32, #tpu.memory_space<vmem>>, vector<1x1x16x16xf32>
    %274 = vector.shape_cast %273 : vector<1x1x16x16xf32> to vector<16x16xf32>
    %c1_146 = arith.constant 1 : index
    %c1_147 = arith.constant 1 : index
    %275 = vector.load %arg7[%c1_146, %c1_147] : memref<18x18xf32, #tpu.memory_space<vmem>>, vector<16x16xf32>
    tpu.vector_store %arg7[%c1_146, %c1_147], %274 {strides = array<i32>} : memref<18x18xf32, #tpu.memory_space<vmem>>, vector<16x16xf32>,
    %c3_148 = arith.constant 3 : index
    %276 = memref.load %arg3[%c3_148] : memref<4xf32, #tpu.memory_space<smem>>
    %277 = vector.broadcast %276 : f32 to vector<16x16xf32>
    %c0_149 = arith.constant 0 : index
    %c0_150 = arith.constant 0 : index
    %278 = vector.load %arg7[%c0_149, %c0_150] : memref<18x18xf32, #tpu.memory_space<vmem>>, vector<16x18xf32>
    %279 = vector.extract_strided_slice %278 {offsets = [0, 0], sizes = [16, 16], strides = [1, 1]} : vector<16x18xf32> to vector<16x16xf32>
    %c3_151 = arith.constant 3 : index
    %c0_152 = arith.constant 0 : index
    %280 = memref.load %arg2[%c3_151, %c0_152] : memref<4x9xf32, #tpu.memory_space<smem>>
    %281 = vector.broadcast %280 : f32 to vector<16x16xf32>
    %282 = arith.mulf %279, %281 : vector<16x16xf32>
    %283 = arith.addf %277, %282 : vector<16x16xf32>
    %284 = vector.extract_strided_slice %278 {offsets = [0, 1], sizes = [16, 16], strides = [1, 1]} : vector<16x18xf32> to vector<16x16xf32>
    %c3_153 = arith.constant 3 : index
    %c1_154 = arith.constant 1 : index
    %285 = memref.load %arg2[%c3_153, %c1_154] : memref<4x9xf32, #tpu.memory_space<smem>>
    %286 = vector.broadcast %285 : f32 to vector<16x16xf32>
    %287 = arith.mulf %284, %286 : vector<16x16xf32>
    %288 = arith.addf %283, %287 : vector<16x16xf32>
    %289 = vector.extract_strided_slice %278 {offsets = [0, 2], sizes = [16, 16], strides = [1, 1]} : vector<16x18xf32> to vector<16x16xf32>
    %c3_155 = arith.constant 3 : index
    %c2_156 = arith.constant 2 : index
    %290 = memref.load %arg2[%c3_155, %c2_156] : memref<4x9xf32, #tpu.memory_space<smem>>
    %291 = vector.broadcast %290 : f32 to vector<16x16xf32>
    %292 = arith.mulf %289, %291 : vector<16x16xf32>
    %293 = arith.addf %288, %292 : vector<16x16xf32>
    %c1_157 = arith.constant 1 : index
    %c0_158 = arith.constant 0 : index
    %294 = vector.load %arg7[%c1_157, %c0_158] : memref<18x18xf32, #tpu.memory_space<vmem>>, vector<16x18xf32>
    %295 = vector.extract_strided_slice %294 {offsets = [0, 0], sizes = [16, 16], strides = [1, 1]} : vector<16x18xf32> to vector<16x16xf32>
    %c3_159 = arith.constant 3 : index
    %c3_160 = arith.constant 3 : index
    %296 = memref.load %arg2[%c3_159, %c3_160] : memref<4x9xf32, #tpu.memory_space<smem>>
    %297 = vector.broadcast %296 : f32 to vector<16x16xf32>
    %298 = arith.mulf %295, %297 : vector<16x16xf32>
    %299 = arith.addf %293, %298 : vector<16x16xf32>
    %300 = vector.extract_strided_slice %294 {offsets = [0, 1], sizes = [16, 16], strides = [1, 1]} : vector<16x18xf32> to vector<16x16xf32>
    %c3_161 = arith.constant 3 : index
    %c4_162 = arith.constant 4 : index
    %301 = memref.load %arg2[%c3_161, %c4_162] : memref<4x9xf32, #tpu.memory_space<smem>>
    %302 = vector.broadcast %301 : f32 to vector<16x16xf32>
    %303 = arith.mulf %300, %302 : vector<16x16xf32>
    %304 = arith.addf %299, %303 : vector<16x16xf32>
    %305 = vector.extract_strided_slice %294 {offsets = [0, 2], sizes = [16, 16], strides = [1, 1]} : vector<16x18xf32> to vector<16x16xf32>
    %c3_163 = arith.constant 3 : index
    %c5_164 = arith.constant 5 : index
    %306 = memref.load %arg2[%c3_163, %c5_164] : memref<4x9xf32, #tpu.memory_space<smem>>
    %307 = vector.broadcast %306 : f32 to vector<16x16xf32>
    %308 = arith.mulf %305, %307 : vector<16x16xf32>
    %309 = arith.addf %304, %308 : vector<16x16xf32>
    %c2_165 = arith.constant 2 : index
    %c0_166 = arith.constant 0 : index
    %310 = vector.load %arg7[%c2_165, %c0_166] : memref<18x18xf32, #tpu.memory_space<vmem>>, vector<16x18xf32>
    %311 = vector.extract_strided_slice %310 {offsets = [0, 0], sizes = [16, 16], strides = [1, 1]} : vector<16x18xf32> to vector<16x16xf32>
    %c3_167 = arith.constant 3 : index
    %c6_168 = arith.constant 6 : index
    %312 = memref.load %arg2[%c3_167, %c6_168] : memref<4x9xf32, #tpu.memory_space<smem>>
    %313 = vector.broadcast %312 : f32 to vector<16x16xf32>
    %314 = arith.mulf %311, %313 : vector<16x16xf32>
    %315 = arith.addf %309, %314 : vector<16x16xf32>
    %316 = vector.extract_strided_slice %310 {offsets = [0, 1], sizes = [16, 16], strides = [1, 1]} : vector<16x18xf32> to vector<16x16xf32>
    %c3_169 = arith.constant 3 : index
    %c7_170 = arith.constant 7 : index
    %317 = memref.load %arg2[%c3_169, %c7_170] : memref<4x9xf32, #tpu.memory_space<smem>>
    %318 = vector.broadcast %317 : f32 to vector<16x16xf32>
    %319 = arith.mulf %316, %318 : vector<16x16xf32>
    %320 = arith.addf %315, %319 : vector<16x16xf32>
    %321 = vector.extract_strided_slice %310 {offsets = [0, 2], sizes = [16, 16], strides = [1, 1]} : vector<16x18xf32> to vector<16x16xf32>
    %c3_171 = arith.constant 3 : index
    %c8_172 = arith.constant 8 : index
    %322 = memref.load %arg2[%c3_171, %c8_172] : memref<4x9xf32, #tpu.memory_space<smem>>
    %323 = vector.broadcast %322 : f32 to vector<16x16xf32>
    %324 = arith.mulf %321, %323 : vector<16x16xf32>
    %325 = arith.addf %320, %324 : vector<16x16xf32>
    %c0_173 = arith.constant 0 : index
    %c3_174 = arith.constant 3 : index
    %326 = memref.load %arg4[%c0_173, %c3_174] : memref<8x4xf32, #tpu.memory_space<smem>>
    %327 = vector.broadcast %326 : f32 to vector<16x16xf32>
    %328 = arith.mulf %325, %327 : vector<16x16xf32>
    %329 = arith.addf %244, %328 : vector<16x16xf32>
    %c1_175 = arith.constant 1 : index
    %c3_176 = arith.constant 3 : index
    %330 = memref.load %arg4[%c1_175, %c3_176] : memref<8x4xf32, #tpu.memory_space<smem>>
    %331 = vector.broadcast %330 : f32 to vector<16x16xf32>
    %332 = arith.mulf %325, %331 : vector<16x16xf32>
    %333 = arith.addf %248, %332 : vector<16x16xf32>
    %c2_177 = arith.constant 2 : index
    %c3_178 = arith.constant 3 : index
    %334 = memref.load %arg4[%c2_177, %c3_178] : memref<8x4xf32, #tpu.memory_space<smem>>
    %335 = vector.broadcast %334 : f32 to vector<16x16xf32>
    %336 = arith.mulf %325, %335 : vector<16x16xf32>
    %337 = arith.addf %252, %336 : vector<16x16xf32>
    %c3_179 = arith.constant 3 : index
    %c3_180 = arith.constant 3 : index
    %338 = memref.load %arg4[%c3_179, %c3_180] : memref<8x4xf32, #tpu.memory_space<smem>>
    %339 = vector.broadcast %338 : f32 to vector<16x16xf32>
    %340 = arith.mulf %325, %339 : vector<16x16xf32>
    %341 = arith.addf %256, %340 : vector<16x16xf32>
    %c4_181 = arith.constant 4 : index
    %c3_182 = arith.constant 3 : index
    %342 = memref.load %arg4[%c4_181, %c3_182] : memref<8x4xf32, #tpu.memory_space<smem>>
    %343 = vector.broadcast %342 : f32 to vector<16x16xf32>
    %344 = arith.mulf %325, %343 : vector<16x16xf32>
    %345 = arith.addf %260, %344 : vector<16x16xf32>
    %c5_183 = arith.constant 5 : index
    %c3_184 = arith.constant 3 : index
    %346 = memref.load %arg4[%c5_183, %c3_184] : memref<8x4xf32, #tpu.memory_space<smem>>
    %347 = vector.broadcast %346 : f32 to vector<16x16xf32>
    %348 = arith.mulf %325, %347 : vector<16x16xf32>
    %349 = arith.addf %264, %348 : vector<16x16xf32>
    %c6_185 = arith.constant 6 : index
    %c3_186 = arith.constant 3 : index
    %350 = memref.load %arg4[%c6_185, %c3_186] : memref<8x4xf32, #tpu.memory_space<smem>>
    %351 = vector.broadcast %350 : f32 to vector<16x16xf32>
    %352 = arith.mulf %325, %351 : vector<16x16xf32>
    %353 = arith.addf %268, %352 : vector<16x16xf32>
    %c7_187 = arith.constant 7 : index
    %c3_188 = arith.constant 3 : index
    %354 = memref.load %arg4[%c7_187, %c3_188] : memref<8x4xf32, #tpu.memory_space<smem>>
    %355 = vector.broadcast %354 : f32 to vector<16x16xf32>
    %356 = arith.mulf %325, %355 : vector<16x16xf32>
    %357 = arith.addf %272, %356 : vector<16x16xf32>
    %c0_189 = arith.constant 0 : index
    %c0_190 = arith.constant 0 : index
    %c0_191 = arith.constant 0 : index
    %c0_192 = arith.constant 0 : index
    %358 = vector.load %arg6[%c0_189, %c0_190, %c0_191, %c0_192] : memref<1x8x16x16xf32, #tpu.memory_space<vmem>>, vector<1x1x16x16xf32>
    %359 = vector.shape_cast %358 : vector<1x1x16x16xf32> to vector<16x16xf32>
    %360 = vector.shape_cast %329 : vector<16x16xf32> to vector<1x1x16x16xf32>
    tpu.vector_store %arg6[%c0_189, %c0_190, %c0_191, %c0_192], %360 {strides = array<i32>} : memref<1x8x16x16xf32, #tpu.memory_space<vmem>>, vector<1x1x16x16xf32>,
    %c0_193 = arith.constant 0 : index
    %c1_194 = arith.constant 1 : index
    %c0_195 = arith.constant 0 : index
    %c0_196 = arith.constant 0 : index
    %361 = vector.load %arg6[%c0_193, %c1_194, %c0_195, %c0_196] : memref<1x8x16x16xf32, #tpu.memory_space<vmem>>, vector<1x1x16x16xf32>
    %362 = vector.shape_cast %361 : vector<1x1x16x16xf32> to vector<16x16xf32>
    %363 = vector.shape_cast %333 : vector<16x16xf32> to vector<1x1x16x16xf32>
    tpu.vector_store %arg6[%c0_193, %c1_194, %c0_195, %c0_196], %363 {strides = array<i32>} : memref<1x8x16x16xf32, #tpu.memory_space<vmem>>, vector<1x1x16x16xf32>,
    %c0_197 = arith.constant 0 : index
    %c2_198 = arith.constant 2 : index
    %c0_199 = arith.constant 0 : index
    %c0_200 = arith.constant 0 : index
    %364 = vector.load %arg6[%c0_197, %c2_198, %c0_199, %c0_200] : memref<1x8x16x16xf32, #tpu.memory_space<vmem>>, vector<1x1x16x16xf32>
    %365 = vector.shape_cast %364 : vector<1x1x16x16xf32> to vector<16x16xf32>
    %366 = vector.shape_cast %337 : vector<16x16xf32> to vector<1x1x16x16xf32>
    tpu.vector_store %arg6[%c0_197, %c2_198, %c0_199, %c0_200], %366 {strides = array<i32>} : memref<1x8x16x16xf32, #tpu.memory_space<vmem>>, vector<1x1x16x16xf32>,
    %c0_201 = arith.constant 0 : index
    %c3_202 = arith.constant 3 : index
    %c0_203 = arith.constant 0 : index
    %c0_204 = arith.constant 0 : index
    %367 = vector.load %arg6[%c0_201, %c3_202, %c0_203, %c0_204] : memref<1x8x16x16xf32, #tpu.memory_space<vmem>>, vector<1x1x16x16xf32>
    %368 = vector.shape_cast %367 : vector<1x1x16x16xf32> to vector<16x16xf32>
    %369 = vector.shape_cast %341 : vector<16x16xf32> to vector<1x1x16x16xf32>
    tpu.vector_store %arg6[%c0_201, %c3_202, %c0_203, %c0_204], %369 {strides = array<i32>} : memref<1x8x16x16xf32, #tpu.memory_space<vmem>>, vector<1x1x16x16xf32>,
    %c0_205 = arith.constant 0 : index
    %c4_206 = arith.constant 4 : index
    %c0_207 = arith.constant 0 : index
    %c0_208 = arith.constant 0 : index
    %370 = vector.load %arg6[%c0_205, %c4_206, %c0_207, %c0_208] : memref<1x8x16x16xf32, #tpu.memory_space<vmem>>, vector<1x1x16x16xf32>
    %371 = vector.shape_cast %370 : vector<1x1x16x16xf32> to vector<16x16xf32>
    %372 = vector.shape_cast %345 : vector<16x16xf32> to vector<1x1x16x16xf32>
    tpu.vector_store %arg6[%c0_205, %c4_206, %c0_207, %c0_208], %372 {strides = array<i32>} : memref<1x8x16x16xf32, #tpu.memory_space<vmem>>, vector<1x1x16x16xf32>,
    %c0_209 = arith.constant 0 : index
    %c5_210 = arith.constant 5 : index
    %c0_211 = arith.constant 0 : index
    %c0_212 = arith.constant 0 : index
    %373 = vector.load %arg6[%c0_209, %c5_210, %c0_211, %c0_212] : memref<1x8x16x16xf32, #tpu.memory_space<vmem>>, vector<1x1x16x16xf32>
    %374 = vector.shape_cast %373 : vector<1x1x16x16xf32> to vector<16x16xf32>
    %375 = vector.shape_cast %349 : vector<16x16xf32> to vector<1x1x16x16xf32>
    tpu.vector_store %arg6[%c0_209, %c5_210, %c0_211, %c0_212], %375 {strides = array<i32>} : memref<1x8x16x16xf32, #tpu.memory_space<vmem>>, vector<1x1x16x16xf32>,
    %c0_213 = arith.constant 0 : index
    %c6_214 = arith.constant 6 : index
    %c0_215 = arith.constant 0 : index
    %c0_216 = arith.constant 0 : index
    %376 = vector.load %arg6[%c0_213, %c6_214, %c0_215, %c0_216] : memref<1x8x16x16xf32, #tpu.memory_space<vmem>>, vector<1x1x16x16xf32>
    %377 = vector.shape_cast %376 : vector<1x1x16x16xf32> to vector<16x16xf32>
    %378 = vector.shape_cast %353 : vector<16x16xf32> to vector<1x1x16x16xf32>
    tpu.vector_store %arg6[%c0_213, %c6_214, %c0_215, %c0_216], %378 {strides = array<i32>} : memref<1x8x16x16xf32, #tpu.memory_space<vmem>>, vector<1x1x16x16xf32>,
    %c0_217 = arith.constant 0 : index
    %c7_218 = arith.constant 7 : index
    %c0_219 = arith.constant 0 : index
    %c0_220 = arith.constant 0 : index
    %379 = vector.load %arg6[%c0_217, %c7_218, %c0_219, %c0_220] : memref<1x8x16x16xf32, #tpu.memory_space<vmem>>, vector<1x1x16x16xf32>
    %380 = vector.shape_cast %379 : vector<1x1x16x16xf32> to vector<16x16xf32>
    %381 = vector.shape_cast %357 : vector<16x16xf32> to vector<1x1x16x16xf32>
    tpu.vector_store %arg6[%c0_217, %c7_218, %c0_219, %c0_220], %381 {strides = array<i32>} : memref<1x8x16x16xf32, #tpu.memory_space<vmem>>, vector<1x1x16x16xf32>,
    return
  }
  func.func @transform_0(%arg0: i32) -> (i32, i32, i32, i32) {
    %c0_i32 = arith.constant 0 : i32
    %c0_i32_0 = arith.constant 0 : i32
    %c0_i32_1 = arith.constant 0 : i32
    %c0_i32_2 = arith.constant 0 : i32
    return %arg0, %c0_i32, %c0_i32_0, %c0_i32_1 : i32, i32, i32, i32
  }
  func.func @transform_1(%arg0: i32) -> (i32, i32) {
    %c0_i32 = arith.constant 0 : i32
    %c0_i32_0 = arith.constant 0 : i32
    %c0_i32_1 = arith.constant 0 : i32
    return %c0_i32, %c0_i32_0 : i32, i32
  }
  func.func @transform_2(%arg0: i32) -> i32 {
    %c0_i32 = arith.constant 0 : i32
    %c0_i32_0 = arith.constant 0 : i32
    return %c0_i32 : i32
  }
  func.func @transform_3(%arg0: i32) -> (i32, i32) {
    %c0_i32 = arith.constant 0 : i32
    %c0_i32_0 = arith.constant 0 : i32
    %c0_i32_1 = arith.constant 0 : i32
    return %c0_i32, %c0_i32_0 : i32, i32
  }
  func.func @transform_4(%arg0: i32) -> i32 {
    %c0_i32 = arith.constant 0 : i32
    %c0_i32_0 = arith.constant 0 : i32
    return %c0_i32 : i32
  }
  func.func @transform_5(%arg0: i32) -> (i32, i32, i32, i32) {
    %c0_i32 = arith.constant 0 : i32
    %c0_i32_0 = arith.constant 0 : i32
    %c0_i32_1 = arith.constant 0 : i32
    %c0_i32_2 = arith.constant 0 : i32
    return %arg0, %c0_i32, %c0_i32_0, %c0_i32_1 : i32, i32, i32, i32
  }
}

</mosaic_0001>

<bundles_post_ra>
// kernel: tpu_custom_call.1
= control target key start
LH: loop header
LB: loop body
LE: loop exit
PB: predicated region body
PF: predicated region fallthrough
CT: control target
= control target key end

     0   :  { %s2387_s0 = inlined_call_operand.hbm [shape: f32[2,4,16,16], index: 0, kind: input, shape index: {}]   ;;  %s2388_s1 = inlined_call_operand.vmem [shape: f32[4,9], index: 1, kind: input, shape index: {}]   ;;  %s2389_s2 = inlined_call_operand.vmem [shape: f32[4], index: 2, kind: input, shape index: {}]   ;;  %s2390_s3 = inlined_call_operand.vmem [shape: f32[8,4], index: 3, kind: input, shape index: {}]   ;;  %s2391_s4 = inlined_call_operand.vmem [shape: f32[8], index: 4, kind: input, shape index: {}]   ;;  %s2392_s5 = inlined_call_operand.hbm [shape: f32[2,8,16,16], index: 5, kind: output, shape index: {}]  }
   0x1   :  { %2402 = sst [smem:[#allocation24_spill]] %s2387_s0 }
   0x2   :  { %2403 = sst [smem:[#allocation25_spill]] %s2388_s1 }
   0x3   :  { %2404 = sst [smem:[#allocation26_spill]] %s2389_s2 }
   0x4   :  { %2405 = sst [smem:[#allocation27_spill]] %s2390_s3 }
   0x5   :  { %2406 = sst [smem:[#allocation28_spill]] %s2391_s4 }
   0x6   :  { %10 = vsyncpa [#allocation4], 0 }
   0x7   :  { %12 = vsyncpa [#allocation4 + $0x1], 0 }
   0x8   :  { %13 = vsyncpa [#allocation6], 0 }
   0x9   :  { %14 = vsyncpa [#allocation9], 0 }
   0xa   :  { %15 = vsyncpa [#allocation12], 0 }
   0xb   :  { %16 = vsyncpa [#allocation5], 0 }
   0xc   :  { %18 = vsyncpa [#allocation5 + $0x1], 0  ;;  %s1577_s18 = smov 0   ;;  %s1579_s19 = smov 0  }
   0xd   :  { %s1581_s20 = smov 0   ;;  %s1583_s21 = smov 0  }
   0xe LB: > { %2407 = sst [smem:[#allocation19_spill]] %s1523_s19  ;;  %s1598_s22 = sadd.s32 4294967295, %s1531_s21   ;;  %s1531_s21 = sphi %s1583_s21, %s2436_s21   ;;  %s1527_s20 = sphi %s1581_s20, %s2439_s20   ;;  %s1523_s19 = sphi %s1579_s19, %s2438_s19   ;;  %s1519_s18 = sphi %s1577_s18, %s2437_s18  }
   0xf   : > { %2408 = sst [smem:[#allocation20_spill]] %s1527_s20  ;;  %s1152_s23 = sadd.s32 4294967294, %s1531_s21  }
  0x10   : > { %2409 = sst [smem:[#allocation21_spill]] %s1531_s21  ;;  %p44_p0 = scmp.ne.s32.totalorder %s1523_s19, %s1519_s18 }
  0x11   : > { %p2393_p1 = scmp.eq.s32.totalorder %s1598_s22, 0  ;;  %p158_p3 = scmp.eq.s32.totalorder %s1152_s23, 1 }
  0x12   : > { %p1153_p5 = scmp.ge.s32.totalorder %s1531_s21, 1  ;;  %p165_p7 = scmp.lt.s32.totalorder %s1531_s21, 3 }
  0x13   : > { %p1607_p4 = por %p2393_p1, %p44_p0  ;;  %p1612_p6 = por %p158_p3, %p44_p0 }
  0x14   : > { %s2412_s2 = sld [smem:[#allocation26_spill]]  ;;  %p1620_p8 = pnand %p1153_p5, %p165_p7 }
  0x15   : > { %s2410_s24 = scalar_select %p1607_p4, 1, 0 }
  0x16   : > { %s2411_s25 = scalar_select %p1612_p6, 1, 0 }
  0x17   : > { %s2413_s29 = scalar_select %p1620_p8, 1, 0 }
  0x18   : > { %p1292_p10 = pneg %p1620_p8  ;;  %s2414_s1 = sld [smem:[#allocation25_spill]] }
  0x19   : > { %s2416_s3 = sld [smem:[#allocation27_spill]] }
  0x1a   : > { %s189_s28 = sshll.u32 %s2412_s2, 4  ;;  %p1632_p11 = pnand %p1292_p10, %p2393_p1  ;;  %s190_s28 = int_to_ptr.vmem [resolvable:$true] %s189_s28 }
  0x1b   : > { %s2417_s4 = sld [smem:[#allocation28_spill]]  ;;  %s1367_s15 = scalar_lea.vmem %s190_s28, 16 }
  0x1c   : > { %p1368_p12 = scmp.ne.s32.totalorder %s190_s28, %s1367_s15  ;;  %p1369_p13 = pneg %p1632_p11 }
  0x1d   : > { %p1375_p5 = scmp.lt.s32.totalorder %s190_s28, %s190_s28  ;;  %p1376_p7 = scmp.lt.s32.totalorder %s1367_s15, %s1367_s15 }
  0x1e   : > { %s178_s7 = sshll.u32 %s2414_s1, 4  ;;  %p1370_p0 = pnand %p1369_p13, %p1368_p12  ;;  %s179_s7 = int_to_ptr.vmem [resolvable:$true] %s178_s7 }
  0x1f   : > { %s200_s11 = sshll.u32 %s2416_s3, 4  ;;  %p1377_p10 = por %p1376_p7, %p1375_p5  ;;  %s1639_s11 = int_to_ptr.vmem [resolvable:$true] %s200_s11 }
  0x20   : > { %p1371_p3 = pneg %p1370_p0 }
  0x21   : > { %s211_s14 = sshll.u32 %s2417_s4, 4  ;;  %s212_s14 = int_to_ptr.vmem [resolvable:$true] %s211_s14 }
  0x22   : > { %p1378_p9 = pnand %p1377_p10, %p1371_p3 }
  0x24   : > { %1381 = shalt.err (!%p1378_p9)
}
  0x25   : > { %s1533_s16 = smov [#allocation8]   ;;  %s1382_s17 = scalar_lea.vmem %s179_s7, 64 }
  0x26   : > { %1298 = dma.vmem_to_smem (!%p1632_p11), %s190_s28, 16, %s1533_s16, [#allocation9]  }
  0x27   : > { %p1383_p1 = scmp.ne.s32.totalorder %s179_s7, %s1382_s17  ;;  %p1390_p4 = scmp.lt.s32.totalorder %s179_s7, %s179_s7 }
  0x28   : > { %p1391_p8 = scmp.lt.s32.totalorder %s1382_s17, %s1382_s17 }
  0x29   : > { %p1385_p2 = pnand %p1383_p1, %p1369_p13 }
  0x2a   : > { %p1392_p12 = por %p1391_p8, %p1390_p4 }
  0x2b   : > { %p1386_p6 = pneg %p1385_p2 }
  0x2d   : > { %p1393_p0 = pnand %p1392_p12, %p1386_p6 }
  0x2f   : > { %1396 = shalt.err (!%p1393_p0)
}
  0x30   : > { %s1534_s23 = smov [#allocation7]   ;;  %s1397_s26 = scalar_lea.vmem %s1639_s11, 128 }
  0x31   : > { %1295 = dma.vmem_to_smem (!%p1632_p11), %s179_s7, 64, %s1534_s23, [#allocation6]  }
  0x32   : > { %p1398_p9 = scmp.ne.s32.totalorder %s1639_s11, %s1397_s26  ;;  %p1405_p2 = scmp.lt.s32.totalorder %s1639_s11, %s1639_s11 }
  0x33   : > { %p1406_p5 = scmp.lt.s32.totalorder %s1397_s26, %s1397_s26 }
  0x34   : > { %p1400_p3 = pnand %p1398_p9, %p1369_p13 }
  0x35   : > { %p1407_p4 = por %p1406_p5, %p1405_p2 }
  0x36   : > { %p1401_p1 = pneg %p1400_p3 }
  0x38   : > { %p1408_p6 = pnand %p1407_p4, %p1401_p1 }
  0x3a   : > { %1411 = shalt.err (!%p1408_p6)
}
  0x3b   : > { %s1535_s27 = smov [#allocation10]   ;;  %s1412_s6 = scalar_lea.vmem %s212_s14, 16 }
  0x3c   : > { %1301 = dma.vmem_to_smem (!%p1632_p11), %s1639_s11, 128, %s1535_s27, [#allocation9]  }
  0x3d   : > { %p1413_p8 = scmp.ne.s32.totalorder %s212_s14, %s1412_s6  ;;  %p1420_p12 = scmp.lt.s32.totalorder %s212_s14, %s212_s14 }
  0x3e   : > { %p1421_p0 = scmp.lt.s32.totalorder %s1412_s6, %s1412_s6 }
  0x3f   : > { %p1415_p7 = pnand %p1413_p8, %p1369_p13 }
  0x40   : > { %p1422_p9 = por %p1421_p0, %p1420_p12 }
  0x41   : > { %p1416_p10 = pneg %p1415_p7 }
  0x43   : > { %p1423_p3 = pnand %p1422_p9, %p1416_p10 }
  0x45   : > { %1426 = shalt.err (!%p1423_p3)
}
  0x46   : > { %s1536_s7 = smov [#allocation11]   ;;  %s1676_s9 = sadd.s32 1, %s1531_s21  }
  0x47   : > { %1304 = dma.vmem_to_smem (!%p1632_p11), %s212_s14, 16, %s1536_s7, [#allocation12]  }
  0x48   : > { %2418 = sst [smem:[#allocation22_spill]] %s1676_s9  ;;  %s28_s10 = ssub.s32 %s1531_s21, %s1676_s9 }
  0x49   : > { %p29_p13 = scmp.eq.s32.totalorder %s28_s10, 0  ;;  %s31_s11 = sadd.s32 1, %s1527_s20 }
  0x4a   : > { %p38_p1 = scmp.ne.s32.totalorder %s1527_s20, %s1523_s19  ;;  %p39_p2 = scmp.eq.s32.totalorder %s1531_s21, 0 }
  0x4b   : > { %s1685_s8 = scalar_select %p29_p13, %s1527_s20, %s31_s11  }
  0x4c   : > { %p40_p5 = por %p39_p2, %p38_p1  ;;  %p2420_p4 = scmp.eq.s32.totalorder %s1598_s22, 1 }
  0x4d   : > { %2419 = sst [smem:[#allocation23_spill]] %s1685_s8  ;;  %p1317_p8 = scmp.lt.s32.totalorder %s1531_s21, 2 }
  0x4e   : > { %p1689_p6 = por %p2420_p4, %p38_p1  ;;  %s222_s13 = sand.u32 1, %s1527_s20  }
  0x4f   : > { %s1159_s15 = sshll.u32 %s222_s13, 6  ;;  %s1270_s14 = sshll.u32 %s1531_s21, 10 }
  0x50   : > { %s2421_s12 = scalar_select %p1689_p6, 1, 0 }
  0x51   : > { %s2422_s0 = sld [smem:[#allocation24_spill]]  ;;  %s226_s26 = scalar_lea.vmem [#allocation3], %s1159_s15 }
  0x52   : > { %s233_s27 = sshll.u32 %s226_s26, 4  ;;  %p1703_p11 = pnand %p1317_p8, %p40_p5  ;;  %s1701_s27 = int_to_ptr.vmem [resolvable:$true] %s233_s27 }
  0x53   : > { %s1707_s30 = scalar_lea.sflag [#allocation4], %s222_s13 }
  0x54   : > { %p1429_p10 = pneg %p1703_p11 }
  0x57   : > { %s1699_s23 = scalar_lea.hbm %s2422_s0, %s1270_s14  ;;  %s1432_s11 = scalar_lea.hbm %s2422_s0, 2048 }
  0x58   : > { %s1427_s6 = scalar_lea.hbm %s1699_s23, 1024  ;;  %p1433_p9 = scmp.lt.s32.totalorder %s1699_s23, %s2422_s0 }
  0x59   : > { %p1428_p7 = scmp.ne.s32.totalorder %s1699_s23, %s1427_s6  ;;  %p1434_p3 = scmp.lt.s32.totalorder %s1432_s11, %s1427_s6 }
  0x5b   : > { %p1430_p12 = pnand %p1429_p10, %p1428_p7  ;;  %p1435_p13 = por %p1434_p3, %p1433_p9 }
  0x5d   : > { %p1431_p0 = pneg %p1430_p12 }
  0x5f   : > { %p1436_p1 = pnand %p1435_p13, %p1431_p0 }
  0x61   : > { %1439 = shalt.err (!%p1436_p1)
}
  0x62   : > { %s1440_s13 = scalar_lea.vmem %s1701_s27, 1024  ;;  %s1537_s16 = smov [#allocation3]  }
  0x63   : > { %p1441_p2 = scmp.ne.s32.totalorder %s1701_s27, %s1440_s13  ;;  %s1445_s17 = sshll.u32 %s1537_s16, 4  ;;  %s1446_s17 = int_to_ptr.vmem [resolvable:$false] %s1445_s17 }
  0x64   : > { %s1447_s26 = scalar_lea.vmem %s1446_s17, 2048  ;;  %p1448_p8 = scmp.lt.s32.totalorder %s1701_s27, %s1446_s17 }
  0x65   : > { %p1443_p5 = pnand %p1441_p2, %p1429_p10  ;;  %p1449_p7 = scmp.lt.s32.totalorder %s1447_s26, %s1440_s13 }
  0x67   : > { %p1444_p4 = pneg %p1443_p5  ;;  %p1450_p12 = por %p1449_p7, %p1448_p8 }
  0x69   : > { %p1451_p6 = pnand %p1450_p12, %p1444_p4 }
  0x6b   : > { %1454 = shalt.err (!%p1451_p6)
}
  0x6c   : > { %s1538_s6 = smov 128   ;;  %s1539_s7 = smov 8  }
  0x6d   : > { %1308 = dma.hbm_to_vmem [thread:$0]  (!%p1703_p11), %s1699_s23, 1024, %s1701_s27, %s1707_s30, %s1538_s6, %s1538_s6, %s1539_s7  }
  0x6e   : > { %p2424_p10 = scmp.ne.s32.totalorder %s2413_s29, 0 }
  0x6f   : > { %s1731_s10 = sand.u32 (!%p2424_p10), 1, %s1523_s19   ;;  %p2425_p6 = scmp.ne.s32.totalorder (!%p2424_p10), %s2410_s24, 0 }
  0x70   : > { %245 = sbr.rel (%p2424_p10) target bundleno = 492 (0x1ec), region = 40  ;;  %s1163_s11 = sshll.u32 (!%p2424_p10), %s1731_s10, 6 }
  0x71   : > { %s248_s15 = scalar_lea.sflag (!%p2424_p10), [#allocation4], %s1731_s10  ;;  %s251_s14 = scalar_lea.vmem (!%p2424_p10), [#allocation3], %s1163_s11 }
  0x75   : > { %1498 = dma.done.wait (%p2425_p6), %s248_s15, 1024  }
  0x76   : > { %1500 = vsyncadd (%p2425_p6), %s248_s15, 4294966272  ;;  %p2426_p0 = scmp.eq.s32.totalorder %s1598_s22, 0 }
  0x78   : > { %1502 = dma.done.wait (%p2426_p0), [#allocation6], 64   ;;  %p2427_p11 = pmov %p2426_p0 }
  0x79   : > { %p2428_p9 = pmov %p2426_p0 }
  0x7a   : > { %1504 = vsyncadd (%p2427_p11), [#allocation6], 4294967232 }
  0x7b   : > { %1506 = dma.done.wait (%p2428_p9), [#allocation9], 144   ;;  %p2429_p3 = pmov %p2426_p0 }
  0x7c   : > { %p2430_p13 = pmov %p2426_p0 }
  0x7d   : > { %1508 = vsyncadd (%p2429_p3), [#allocation9], 4294967152 }
  0x7e   : > { %1510 = dma.done.wait (%p2430_p13), [#allocation12], 16   ;;  %p2431_p1 = pmov %p2426_p0 }
  0x80   : > { %1512 = vsyncadd (%p2431_p1), [#allocation12], 4294967280 }
  0x81   : > { %272 = sfence }
  0x82   : > { %v316_v0 = vld [vmem:[%s251_s14] sm:$0xff]  ;;  %v1191_v1 = vld [vmem:[%s251_s14 + $0x10] sm:$0xff]  ;;  %vm295_vm0 = vcmask 146432   ;;  %s1540_s24 = smov 1   ;;  %vm298_vm1 = vcmask 140288   ;;  %v317_v2 = vld [vmem:[%s251_s14 + $0x8] sm:$0xff] }
  0x83   : > { %320 = vrot.lane.b32.xlu0 %v316_v0, %s1540_s24  ;;  %492 = vrot.lane.b32.xlu1 %v1191_v1, %s1540_s24  ;;  %v1192_v3 = vld [vmem:[%s251_s14 + $0x18] sm:$0xff]  ;;  %v1541_v4 = vmov 0.0   ;;  %v1212_v5 = vld [vmem:[%s251_s14 + $0x28] sm:$0xff]  ;;  %vm326_vm2 = vcmask 138248   ;;  %s1176_s29 = sld [smem:[#allocation7 + $0x1]]  ;;  %s1542_s30 = smov 127  }
  0x84   : > { %296 = vst.msk [vmem:[#allocation2] sm:$0xff] %vm295_vm0, %v1541_v4  ;;  %297 = vst.msk [vmem:[#allocation2 + $0x8] sm:$0xff] %vm295_vm0, %v1541_v4  ;;  %v1211_v6 = vld [vmem:[%s251_s14 + $0x20] sm:$0xff]  ;;  %v1232_v7 = vld [vmem:[%s251_s14 + $0x38] sm:$0xff]  ;;  %s1177_s23 = sld [smem:[#allocation7 + $0x2]]  ;;  %s1543_s16 = smov 126  }
  0x85   : > { %299 = vst.msk [vmem:[#allocation2 + $0x10] sm:$0x3] %vm298_vm1, %v1541_v4  ;;  %v1231_v8 = vld [vmem:[%s251_s14 + $0x30] sm:$0xff]  ;;  %s1753_s27 = sld [smem:[#allocation7 + $0x4]]  ;;  %vm1000_vm3 = vcmask 130048   ;;  %p2432_p5 = scmp.ne.s32.totalorder %s2421_s12, 0 }
  0x86   : > { %s1758_s28 = sld [smem:[#allocation7 + $0x5]] }
  0x87   : > { %322 = vrot.lane.b32.xlu0 %v317_v2, %s1540_s24  ;;  %494 = vrot.lane.b32.xlu1 %v1192_v3, %s1540_s24  ;;  %s1776_s13 = sld [smem:[#allocation7 + $0x7]] }
  0x88   : > { %s1783_s17 = sld [smem:[#allocation7 + $0x8]] }
  0x89   : > { %v340_v12 = vstv %s1176_s29  ;;  %s1787_s26 = sld [smem:[#allocation7 + $0x81]] }
  0x8a   : > { %v354_v15 = vstv %s1177_s23  ;;  %s1811_s6 = sld [smem:[#allocation7 + $0x82]] }
  0x8b   : > { %665 = vrot.lane.b32.xlu1 %v1212_v5, %s1540_s24  ;;  %663 = vrot.lane.b32.xlu0 %v1211_v6, %s1540_s24  ;;  %v376_v24 = vstv %s1753_s27  ;;  %s1198_s7 = sld [smem:[#allocation7 + $0x84]] }
  0x8c   : > { %v390_v27 = vstv %s1758_s28  ;;  %s1199_s11 = sld [smem:[#allocation7 + $0x85]] }
  0x8d   : > { %v412_v36 = vstv %s1776_s13  ;;  %s1201_s15 = sld [smem:[#allocation7 + $0x87]] }
  0x8e   : > { %v426_v41 = vstv %s1783_s17  ;;  %s1202_s14 = sld [smem:[#allocation7 + $0x88]] }
  0x8f   : > { %836 = vrot.lane.b32.xlu1 %v1232_v7, %s1540_s24  ;;  %834 = vrot.lane.b32.xlu0 %v1231_v8, %s1540_s24  ;;  %v511_v42 = vstv %s1787_s26  ;;  %s1215_s24 = sld [smem:[#allocation7 + $0x101]] }
  0x90   : > { %v525_v55 = vstv %s1811_s6  ;;  %s1216_s29 = sld [smem:[#allocation7 + $0x102]] }
  0x91   : > { %v547_v58 = vstv %s1198_s7  ;;  %s1218_s23 = sld [smem:[#allocation7 + $0x104]] }
  0x92   : > { %v561_v61 = vstv %s1199_s11  ;;  %s1219_s27 = sld [smem:[#allocation7 + $0x105]] }
  0x93   : > { %v583_v0 = vstv %s1201_s15  ;;  %s1221_s28 = sld [smem:[#allocation7 + $0x107]] }
  0x94   : > { %v597_v3 = vstv %s1202_s14  ;;  %s1222_s13 = sld [smem:[#allocation7 + $0x108]] }
  0x95   : > { %v682_v4 = vstv %s1215_s24  ;;  %s1235_s17 = sld [smem:[#allocation7 + $0x181]] }
  0x96   : > { %v696_v8 = vstv %s1216_s29  ;;  %s1236_s26 = sld [smem:[#allocation7 + $0x182]] }
  0x97   : > { %s1238_s6 = sld [smem:[#allocation7 + $0x184]] }
  0x98   : > { %s1239_s7 = sld [smem:[#allocation7 + $0x185]] }
  0x99   : > { %s1241_s11 = sld [smem:[#allocation7 + $0x187]] }
  0x9a   : > { %s1242_s15 = sld [smem:[#allocation7 + $0x188]] }
  0x9b   : > { %s333_s14 = sld [smem:[#allocation7]] }
  0x9c   : > { %s329_s24 = sld [smem:[#allocation8]] }
  0x9d   : > { %s1178_s29 = sld [smem:[#allocation7 + $0x3]] }
  0x9e   : > { %s1960_s0 = sld [smem:[#allocation11 + $0x6]] }
  0x9f   : > { %s1962_s1 = sld [smem:[#allocation11 + $0x7]] }
  0xa0   : > { %s1964_s2 = sld [smem:[#allocation10 + $0x100]] }
  0xa1   : > { %s1968_s3 = sld [smem:[#allocation10 + $0x180]] }
  0xa2   : > { %s1971_s4 = sld [smem:[#allocation10 + $0x200]] }
  0xa3   : > { %s1973_s8 = sld [smem:[#allocation10 + $0x280]] }
  0xa4   : > { %s1975_s20 = sld [smem:[#allocation10 + $0x300]] }
  0xa5   : > { %s1978_s19 = sld [smem:[#allocation10 + $0x380]] }
  0xa6   : > { %s1987_s9 = sld [smem:[#allocation10 + $0x81]] }
  0xa7   : > { %s1990_s21 = sld [smem:[#allocation10 + $0x101]] }
  0xf5   : > { %v321_v9 = vpop.permute.xlu0 %320  ;;  %v493_v11 = vpop.permute.xlu1 %492 }
  0xf6   : > { %327 = vst.msk [vmem:[#allocation2 + $0x1] sm:$0xff] %vm326_vm2, %v321_v9 }
  0xf9   : > { %v323_v10 = vpop.permute.xlu0 %322  ;;  %v495_v16 = vpop.permute.xlu1 %494 }
  0xfa   : > { %328 = vst.msk [vmem:[#allocation2 + $0x9] sm:$0xff] %vm326_vm2, %v323_v10 }
  0xfd   : > { %v1755_v13 = vld [vmem:[#allocation2] sm:$0xff]  ;;  %v664_v28 = vpop.permute.xlu0 %663  ;;  %v666_v30 = vpop.permute.xlu1 %665 }
  0xfe   : > { %v341_v14 = vmul.f32 %v340_v12, %v1755_v13  ;;  %v1763_v18 = vld [vmem:[#allocation2 + $0x1] sm:$0xff]  ;;  %v355_v21 = vmul.f32 %v354_v15, %v1755_v13 }
  0xff   : > { %v377_v26 = vmul.f32 %v376_v24, %v1763_v18  ;;  %v391_v32 = vmul.f32 %v390_v27, %v1763_v18 }
 0x100   : > { %345 = vrot.lane.b32.xlu0 %v341_v14, %s1542_s30 }
 0x101   : > { %v1761_v17 = vld [vmem:[#allocation2 + $0x8] sm:$0xff]  ;;  %v835_v43 = vpop.permute.xlu0 %834  ;;  %v837_v47 = vpop.permute.xlu1 %836 }
 0x102   : > { %v1765_v19 = vld [vmem:[#allocation2 + $0x2] sm:$0xff]  ;;  %v342_v20 = vmul.f32 %v340_v12, %v1761_v17  ;;  %v1772_v23 = vld [vmem:[#allocation2 + $0xa] sm:$0xff]  ;;  %v356_v25 = vmul.f32 %v354_v15, %v1761_v17  ;;  %v718_v12 = vstv %s1218_s23  ;;  %s1928_s23 = sld [smem:[#allocation7 + $0x80]] }
 0x103   : > { %498 = vst.msk [vmem:[#allocation2 + $0x1] sm:$0xff] %vm326_vm2, %v493_v11  ;;  %v1770_v22 = vld [vmem:[#allocation2 + $0x9] sm:$0xff]  ;;  %v413_v40 = vmul.f32 %v412_v36, %v1765_v19  ;;  %v414_v44 = vmul.f32 %v412_v36, %v1772_v23  ;;  %v427_v45 = vmul.f32 %v426_v41, %v1765_v19  ;;  %v428_v54 = vmul.f32 %v426_v41, %v1772_v23 }
 0x104   : > { %499 = vst.msk [vmem:[#allocation2 + $0x9] sm:$0xff] %vm326_vm2, %v495_v16  ;;  %347 = vrot.lane.b32.xlu1 %v342_v20, %s1542_s30  ;;  %359 = vrot.lane.b32.xlu0 %v355_v21, %s1543_s16  ;;  %v378_v31 = vmul.f32 %v376_v24, %v1770_v22  ;;  %v392_v39 = vmul.f32 %v390_v27, %v1770_v22  ;;  %v732_v16 = vstv %s1219_s27  ;;  %v754_v24 = vstv %s1221_s28  ;;  %s1930_s27 = sld [smem:[#allocation7 + $0x83]] }
 0x105   : > { %v768_v27 = vstv %s1222_s13  ;;  %s1932_s28 = sld [smem:[#allocation7 + $0x86]] }
 0x106   : > { %s1934_s13 = sld [smem:[#allocation7 + $0x100]] }
 0x108   : > { %361 = vrot.lane.b32.xlu1 %v356_v25, %s1543_s16  ;;  %381 = vrot.lane.b32.xlu0 %v377_v26, %s1542_s30 }
 0x10a   : > { %v1789_v29 = vld [vmem:[#allocation2] sm:$0xff] }
 0x10b   : > { %v1793_v33 = vld [vmem:[#allocation2 + $0x8] sm:$0xff]  ;;  %v512_v56 = vmul.f32 %v511_v42, %v1789_v29  ;;  %v526_v59 = vmul.f32 %v525_v55, %v1789_v29 }
 0x10c   : > { %v1795_v34 = vld [vmem:[#allocation2 + $0x1] sm:$0xff]  ;;  %v1800_v37 = vld [vmem:[#allocation2 + $0x9] sm:$0xff]  ;;  %383 = vrot.lane.b32.xlu1 %v378_v31, %s1542_s30  ;;  %395 = vrot.lane.b32.xlu0 %v391_v32, %s1543_s16  ;;  %v513_v51 = vmul.f32 %v511_v42, %v1793_v33  ;;  %v527_v57 = vmul.f32 %v525_v55, %v1793_v33  ;;  %v903_v55 = vstv %s1239_s7  ;;  %s1944_s7 = sld [smem:[#allocation10 + $0x80]] }
 0x10d   : > { %v1797_v35 = vld [vmem:[#allocation2 + $0x2] sm:$0xff]  ;;  %v1803_v38 = vld [vmem:[#allocation2 + $0xa] sm:$0xff]  ;;  %v548_v60 = vmul.f32 %v547_v58, %v1795_v34  ;;  %v549_v62 = vmul.f32 %v547_v58, %v1800_v37  ;;  %v562_v63 = vmul.f32 %v561_v61, %v1795_v34  ;;  %v563_v1 = vmul.f32 %v561_v61, %v1800_v37 }
 0x10e   : > { %669 = vst.msk [vmem:[#allocation2 + $0x1] sm:$0xff] %vm326_vm2, %v664_v28  ;;  %670 = vst.msk [vmem:[#allocation2 + $0x9] sm:$0xff] %vm326_vm2, %v666_v30  ;;  %v584_v2 = vmul.f32 %v583_v0, %v1797_v35  ;;  %v585_v5 = vmul.f32 %v583_v0, %v1803_v38  ;;  %v598_v6 = vmul.f32 %v597_v3, %v1797_v35  ;;  %v853_v30 = vstv %s1235_s17  ;;  %s1937_s17 = sld [smem:[#allocation8 + $0x2]] }
 0x10f   : > { %v599_v9 = vmul.f32 %v597_v3, %v1803_v38  ;;  %v334_v3 = vstv %s333_s14  ;;  %s1951_s14 = sld [smem:[#allocation11 + $0x2]] }
 0x110   : > { %397 = vrot.lane.b32.xlu1 %v392_v39, %s1543_s16  ;;  %417 = vrot.lane.b32.xlu0 %v413_v40, %s1542_s30  ;;  %v867_v40 = vstv %s1236_s26  ;;  %s1940_s26 = sld [smem:[#allocation7 + $0x103]] }
 0x114   : > { %419 = vrot.lane.b32.xlu1 %v414_v44, %s1542_s30  ;;  %431 = vrot.lane.b32.xlu0 %v427_v45, %s1543_s16  ;;  %v889_v45 = vstv %s1238_s6  ;;  %s1942_s6 = sld [smem:[#allocation10]] }
 0x115   : > { %v1818_v46 = vld [vmem:[#allocation2] sm:$0xff]  ;;  %v1820_v48 = vld [vmem:[#allocation2 + $0x8] sm:$0xff] }
 0x116   : > { %v1822_v49 = vld [vmem:[#allocation2 + $0x1] sm:$0xff]  ;;  %v1829_v52 = vld [vmem:[#allocation2 + $0x9] sm:$0xff]  ;;  %v684_v7 = vmul.f32 %v682_v4, %v1820_v48  ;;  %v683_v10 = vmul.f32 %v682_v4, %v1818_v46  ;;  %v698_v11 = vmul.f32 %v696_v8, %v1820_v48  ;;  %v697_v14 = vmul.f32 %v696_v8, %v1818_v46 }
 0x117   : > { %v1824_v50 = vld [vmem:[#allocation2 + $0x2] sm:$0xff]  ;;  %v1832_v53 = vld [vmem:[#allocation2 + $0xa] sm:$0xff]  ;;  %v719_v15 = vmul.f32 %v718_v12, %v1822_v49  ;;  %v720_v20 = vmul.f32 %v718_v12, %v1829_v52  ;;  %v733_v21 = vmul.f32 %v732_v16, %v1822_v49  ;;  %v734_v25 = vmul.f32 %v732_v16, %v1829_v52 }
 0x118   : > { %840 = vst.msk [vmem:[#allocation2 + $0x1] sm:$0xff] %vm326_vm2, %v835_v43  ;;  %841 = vst.msk [vmem:[#allocation2 + $0x9] sm:$0xff] %vm326_vm2, %v837_v47  ;;  %433 = vrot.lane.b32.xlu1 %v428_v54, %s1543_s16  ;;  %518 = vrot.lane.b32.xlu0 %v513_v51, %s1542_s30  ;;  %v755_v26 = vmul.f32 %v754_v24, %v1824_v50  ;;  %v756_v31 = vmul.f32 %v754_v24, %v1832_v53 }
 0x119   : > { %v769_v32 = vmul.f32 %v768_v27, %v1824_v50  ;;  %v770_v41 = vmul.f32 %v768_v27, %v1832_v53  ;;  %v335_v4 = vmul.f32 %v334_v3, %v1755_v13 }
 0x11c   : > { %516 = vrot.lane.b32.xlu1 %v512_v56, %s1542_s30  ;;  %532 = vrot.lane.b32.xlu0 %v527_v57, %s1543_s16 }
 0x11f   : > { %v1879_v28 = vld [vmem:[#allocation2 + $0x8] sm:$0xff]  ;;  %v1886_v39 = vld [vmem:[#allocation2] sm:$0xff] }
 0x120   : > { %530 = vrot.lane.b32.xlu1 %v526_v59, %s1543_s16  ;;  %552 = vrot.lane.b32.xlu0 %v548_v60, %s1542_s30  ;;  %v855_v36 = vmul.f32 %v853_v30, %v1879_v28  ;;  %v854_v42 = vmul.f32 %v853_v30, %v1886_v39  ;;  %v868_v43 = vmul.f32 %v867_v40, %v1886_v39  ;;  %v1893_v44 = vld [vmem:[#allocation2 + $0x1] sm:$0xff]  ;;  %v1899_v54 = vld [vmem:[#allocation2 + $0x9] sm:$0xff]  ;;  %v925_v59 = vstv %s1241_s11  ;;  %s1947_s11 = sld [smem:[#allocation11]] }
 0x121   : > { %v869_v47 = vmul.f32 %v867_v40, %v1879_v28  ;;  %v890_v51 = vmul.f32 %v889_v45, %v1893_v44  ;;  %v891_v56 = vmul.f32 %v889_v45, %v1899_v54  ;;  %v904_v57 = vmul.f32 %v903_v55, %v1893_v44  ;;  %v1905_v58 = vld [vmem:[#allocation2 + $0x2] sm:$0xff] }
 0x122   : > { %v905_v60 = vmul.f32 %v903_v55, %v1899_v54  ;;  %v926_v61 = vmul.f32 %v925_v59, %v1905_v58 }
 0x124   : > { %554 = vrot.lane.b32.xlu1 %v549_v62, %s1542_s30  ;;  %566 = vrot.lane.b32.xlu0 %v562_v63, %s1543_s16  ;;  %v1911_v62 = vld [vmem:[#allocation2 + $0xa] sm:$0xff]  ;;  %v939_v63 = vstv %s1242_s15  ;;  %s1949_s15 = sld [smem:[#allocation11 + $0x1]] }
 0x125   : > { %v927_v0 = vmul.f32 %v925_v59, %v1911_v62 }
 0x128   : > { %568 = vrot.lane.b32.xlu1 %v563_v1, %s1543_s16  ;;  %588 = vrot.lane.b32.xlu0 %v584_v2, %s1542_s30  ;;  %v940_v1 = vmul.f32 %v939_v63, %v1905_v58  ;;  %v941_v2 = vmul.f32 %v939_v63, %v1911_v62 }
 0x12c   : > { %590 = vrot.lane.b32.xlu1 %v585_v5, %s1542_s30  ;;  %602 = vrot.lane.b32.xlu0 %v598_v6, %s1543_s16  ;;  %v330_v5 = vstv %s329_s24  ;;  %s1953_s24 = sld [smem:[#allocation11 + $0x3]] }
 0x12d   : > { %v337_v6 = vadd.f32 %v335_v4, %v330_v5  ;;  %v541_v4 = vstv %s1930_s27  ;;  %s2002_s27 = sld [smem:[#allocation10 + $0x201]] }
 0x130   : > { %604 = vrot.lane.b32.xlu1 %v599_v9, %s1543_s16  ;;  %689 = vrot.lane.b32.xlu0 %v684_v7, %s1542_s30  ;;  %v336_v7 = vmul.f32 %v334_v3, %v1761_v17 }
 0x134   : > { %687 = vrot.lane.b32.xlu1 %v683_v10, %s1542_s30  ;;  %703 = vrot.lane.b32.xlu0 %v698_v11, %s1543_s16  ;;  %v370_v10 = vstv %s1178_s29  ;;  %v338_v11 = vadd.f32 %v336_v7, %v330_v5  ;;  %s1956_s29 = sld [smem:[#allocation11 + $0x4]]  ;;  %v577_v5 = vstv %s1932_s28 }
 0x135   : > { %v676_v7 = vstv %s1934_s13  ;;  %s2008_s28 = sld [smem:[#allocation10 + $0x281]] }
 0x136   : > { %s2010_s13 = sld [smem:[#allocation10 + $0x301]] }
 0x138   : > { %701 = vrot.lane.b32.xlu1 %v697_v14, %s1543_s16  ;;  %723 = vrot.lane.b32.xlu0 %v719_v15, %s1542_s30 }
 0x13c   : > { %725 = vrot.lane.b32.xlu1 %v720_v20, %s1542_s30  ;;  %737 = vrot.lane.b32.xlu0 %v733_v21, %s1543_s16  ;;  %v371_v20 = vmul.f32 %v370_v10, %v1763_v18 }
 0x140   : > { %739 = vrot.lane.b32.xlu1 %v734_v25, %s1543_s16  ;;  %759 = vrot.lane.b32.xlu0 %v755_v26, %s1542_s30  ;;  %v372_v26 = vmul.f32 %v370_v10, %v1770_v22  ;;  %v446_v10 = vstv %s1944_s7  ;;  %s2231_s7 = sld [smem:[#allocation7 + $0x186]] }
 0x144   : > { %761 = vrot.lane.b32.xlu1 %v756_v31, %s1542_s30  ;;  %773 = vrot.lane.b32.xlu0 %v769_v32, %s1543_s16 }
 0x148   : > { %775 = vrot.lane.b32.xlu1 %v770_v41, %s1543_s16  ;;  %860 = vrot.lane.b32.xlu0 %v855_v36, %s1542_s30 }
 0x14c   : > { %858 = vrot.lane.b32.xlu1 %v854_v42, %s1542_s30  ;;  %872 = vrot.lane.b32.xlu0 %v868_v43, %s1543_s16 }
 0x150   : > { %874 = vrot.lane.b32.xlu1 %v869_v47, %s1543_s16  ;;  %894 = vrot.lane.b32.xlu0 %v890_v51, %s1542_s30 }
 0x154   : > { %896 = vrot.lane.b32.xlu1 %v891_v56, %s1542_s30  ;;  %908 = vrot.lane.b32.xlu0 %v904_v57, %s1543_s16 }
 0x158   : > { %910 = vrot.lane.b32.xlu1 %v905_v60, %s1543_s16  ;;  %930 = vrot.lane.b32.xlu0 %v926_v61, %s1542_s30 }
 0x15c   : > { %932 = vrot.lane.b32.xlu1 %v927_v0, %s1542_s30  ;;  %944 = vrot.lane.b32.xlu0 %v940_v1, %s1543_s16  ;;  %s1923_s30 = sld [smem:[#allocation7 + $0x6]] }
 0x160   : > { %946 = vrot.lane.b32.xlu1 %v941_v2, %s1543_s16  ;;  %s1925_s16 = sld [smem:[#allocation8 + $0x1]] }
 0x162   : > { %v406_v27 = vstv %s1923_s30  ;;  %s1958_s30 = sld [smem:[#allocation11 + $0x5]] }
 0x163   : > { %v407_v40 = vmul.f32 %v406_v27, %v1765_v19  ;;  %v408_v47 = vmul.f32 %v406_v27, %v1772_v23  ;;  %v505_v23 = vstv %s1928_s23  ;;  %s1984_s23 = sld [smem:[#allocation10 + $0x1]]  ;;  %v677_v27 = vmul.f32 %v676_v7, %v1818_v46 }
 0x164   : > { %v507_v61 = vmul.f32 %v505_v23, %v1793_v33  ;;  %v506_v1 = vmul.f32 %v505_v23, %v1789_v29  ;;  %v712_v29 = vstv %s1940_s26  ;;  %v470_v46 = vstv %s1973_s8  ;;  %s2186_s8 = sld [smem:[#allocation10 + $0x302]] }
 0x165   : > { %s2201_s26 = sld [smem:[#allocation7 + $0x183]] }
 0x166   : > { %v501_v63 = vstv %s1925_s16  ;;  %s1997_s16 = sld [smem:[#allocation10 + $0x181]] }
 0x167   : > { %v509_v33 = vadd.f32 %v507_v61, %v501_v63 }
 0x16c   : > { %v629_v23 = vstv %s1997_s16  ;;  %s2274_s16 = sld [smem:[#allocation10 + $0x383]] }
 0x172   : > { %v346_v8 = vpop.permute.xlu0 %345 }
 0x173   : > { %v351_v9 = vadd.f32 %v346_v8, %v337_v6  ;;  %v672_v6 = vstv %s1937_s17  ;;  %v301_v8 = vstv %s1947_s11  ;;  %s2018_s17 = sld [smem:[#allocation10 + $0x381]] }
 0x174   : > { %s2233_s11 = sld [smem:[#allocation10 + $0x3]] }
 0x176   : > { %v348_v12 = vpop.permute.xlu1 %347  ;;  %v360_v14 = vpop.permute.xlu0 %359 }
 0x177   : > { %v352_v15 = vadd.f32 %v348_v12, %v338_v11  ;;  %v365_v16 = vadd.f32 %v360_v14, %v351_v9  ;;  %v440_v9 = vstv %s1942_s6  ;;  %v303_v11 = vstv %s1949_s15  ;;  %s2188_s6 = sld [smem:[#allocation10 + $0x382]] }
 0x178   : > { %v508_v14 = vadd.f32 %v506_v1, %v501_v63  ;;  %s2247_s15 = sld [smem:[#allocation10 + $0x83]] }
 0x179   : > { %v373_v13 = vadd.f32 %v371_v20, %v365_v16  ;;  %v305_v16 = vstv %s1951_s14  ;;  %s2261_s14 = sld [smem:[#allocation10 + $0x103]] }
 0x17a   : > { %v362_v17 = vpop.permute.xlu1 %361  ;;  %v382_v21 = vpop.permute.xlu0 %381 }
 0x17b   : > { %v366_v24 = vadd.f32 %v362_v17, %v352_v15  ;;  %v387_v25 = vadd.f32 %v382_v21, %v373_v13  ;;  %v542_v15 = vmul.f32 %v541_v4, %v1795_v34  ;;  %v543_v17 = vmul.f32 %v541_v4, %v1800_v37 }
 0x17c   : > { %v578_v21 = vmul.f32 %v577_v5, %v1797_v35  ;;  %v307_v37 = vstv %s1953_s24  ;;  %v311_v35 = vstv %s1958_s30  ;;  %s2265_s24 = sld [smem:[#allocation10 + $0x183]] }
 0x17d   : > { %v374_v18 = vadd.f32 %v372_v26, %v366_v24  ;;  %v579_v24 = vmul.f32 %v577_v5, %v1803_v38  ;;  %v678_v26 = vmul.f32 %v676_v7, %v1820_v48  ;;  %v315_v38 = vstv %s1962_s1  ;;  %s2161_s1 = sld [smem:[#allocation10 + $0x82]] }
 0x17e   : > { %v384_v30 = vpop.permute.xlu1 %383  ;;  %v396_v31 = vpop.permute.xlu0 %395  ;;  %v458_v48 = vstv %s1968_s3  ;;  %v641_v5 = vstv %s2008_s28  ;;  %s2131_s3 = sld [smem:[#allocation7 + $0x180]] }
 0x17f   : > { %v388_v32 = vadd.f32 %v384_v30, %v374_v18  ;;  %v401_v36 = vadd.f32 %v396_v31, %v387_v25  ;;  %v309_v18 = vstv %s1956_s29  ;;  %v313_v30 = vstv %s1960_s0  ;;  %s2151_s0 = sld [smem:[#allocation10 + $0x2]] }
 0x180   : > { %v452_v31 = vstv %s1964_s2  ;;  %s2123_s2 = sld [smem:[#allocation7 + $0x106]] }
 0x181   : > { %v409_v22 = vadd.f32 %v407_v40, %v401_v36  ;;  %v464_v40 = vstv %s1971_s4  ;;  %s2141_s4 = sld [smem:[#allocation8 + $0x3]] }
 0x182   : > { %v398_v41 = vpop.permute.xlu1 %397  ;;  %v418_v42 = vpop.permute.xlu0 %417  ;;  %s2267_s29 = sld [smem:[#allocation10 + $0x203]] }
 0x183   : > { %v402_v43 = vadd.f32 %v398_v41, %v388_v32  ;;  %v423_v45 = vadd.f32 %v418_v42, %v409_v22  ;;  %v476_v22 = vstv %s1975_s20  ;;  %s2179_s20 = sld [smem:[#allocation10 + $0x182]] }
 0x184   : > { %s2269_s30 = sld [smem:[#allocation10 + $0x283]] }
 0x185   : > { %v410_v19 = vadd.f32 %v408_v47, %v402_v43  ;;  %v482_v43 = vstv %s1978_s19  ;;  %v2027_v47 = vadd.f32 %v678_v26, %v672_v6  ;;  %s2171_s19 = sld [smem:[#allocation10 + $0x102]] }
 0x186   : > { %v420_v51 = vpop.permute.xlu1 %419  ;;  %v432_v55 = vpop.permute.xlu0 %431 }
 0x187   : > { %v424_v56 = vadd.f32 %v420_v51, %v410_v19  ;;  %v1966_v57 = vadd.f32 %v432_v55, %v423_v45  ;;  %v2029_v19 = vadd.f32 %v677_v27, %v672_v6  ;;  %v611_v51 = vstv %s1984_s23  ;;  %s2272_s23 = sld [smem:[#allocation10 + $0x303]] }
 0x188   : > { %v617_v55 = vstv %s1987_s9  ;;  %s2183_s9 = sld [smem:[#allocation10 + $0x282]] }
 0x189   : > { %v453_v1 = vmul.f32 %v452_v31, %v1966_v57  ;;  %v465_v6 = vmul.f32 %v464_v40, %v1966_v57  ;;  %v471_v7 = vmul.f32 %v470_v46, %v1966_v57 }
 0x18a   : > { %v434_v59 = vpop.permute.xlu1 %433  ;;  %v519_v60 = vpop.permute.xlu0 %518 }
 0x18b   : > { %v1981_v0 = vadd.f32 %v434_v59, %v424_v56  ;;  %v523_v12 = vadd.f32 %v519_v60, %v509_v33  ;;  %v623_v56 = vstv %s1990_s21  ;;  %v441_v59 = vmul.f32 %v440_v9, %v1966_v57  ;;  %s2181_s21 = sld [smem:[#allocation10 + $0x202]] }
 0x18c   : > { %v447_v60 = vmul.f32 %v446_v10, %v1966_v57  ;;  %v635_v33 = vstv %s2002_s27  ;;  %s1168_s27 = sshll.u32 %s1731_s10, 7 }
 0x18d   : > { %s2295_s28 = scalar_lea.vmem [#allocation13], %s1168_s27 }
 0x18e   : > { %v517_v2 = vpop.permute.xlu1 %516  ;;  %v533_v3 = vpop.permute.xlu0 %532 }
 0x18f   : > { %v522_v34 = vadd.f32 %v517_v2, %v508_v14  ;;  %v537_v25 = vadd.f32 %v533_v3, %v523_v12  ;;  %v459_v2 = vmul.f32 %v458_v48, %v1966_v57 }
 0x191   : > { %v545_v36 = vadd.f32 %v543_v17, %v537_v25  ;;  %v653_v17 = vstv %s2018_s17  ;;  %v449_v25 = vadd.f32 %v447_v60, %v303_v11  ;;  %s1038_s17 = sshll.u32 %s2295_s28, 4  ;;  %s2324_s17 = int_to_ptr.vmem [resolvable:$true] %s1038_s17 }
 0x192   : > { %v531_v20 = vpop.permute.xlu1 %530  ;;  %v553_v13 = vpop.permute.xlu0 %552 }
 0x193   : > { %v536_v32 = vadd.f32 %v531_v20, %v522_v34  ;;  %v483_v20 = vmul.f32 %v482_v43, %v1966_v57  ;;  %v443_v34 = vadd.f32 %v441_v59, %v301_v8  ;;  %v461_v59 = vadd.f32 %v459_v2, %v307_v37 }
 0x194   : > { %v484_v2 = vmul.f32 %v482_v43, %v1981_v0 }
 0x195   : > { %v544_v45 = vadd.f32 %v542_v15, %v536_v32  ;;  %v477_v15 = vmul.f32 %v476_v22, %v1966_v57  ;;  %v455_v32 = vadd.f32 %v453_v1, %v305_v16  ;;  %v454_v57 = vmul.f32 %v452_v31, %v1981_v0 }
 0x196   : > { %v555_v41 = vpop.permute.xlu1 %554  ;;  %v567_v42 = vpop.permute.xlu0 %566  ;;  %v460_v31 = vmul.f32 %v458_v48, %v1981_v0  ;;  %v478_v1 = vmul.f32 %v476_v22, %v1981_v0 }
 0x197   : > { %v558_v61 = vadd.f32 %v553_v13, %v544_v45  ;;  %v559_v63 = vadd.f32 %v555_v41, %v545_v36  ;;  %v647_v13 = vstv %s2010_s13  ;;  %v442_v36 = vmul.f32 %v440_v9, %v1981_v0  ;;  %s1271_s13 = sshll.u32 %s1598_s22, 11 }
 0x198   : > { %v448_v41 = vmul.f32 %v446_v10, %v1981_v0  ;;  %v479_v9 = vadd.f32 %v477_v15, %v313_v30  ;;  %v485_v10 = vadd.f32 %v483_v20, %v315_v38 }
 0x199   : > { %v572_v12 = vadd.f32 %v567_v42, %v558_v61  ;;  %v466_v61 = vmul.f32 %v464_v40, %v1981_v0 }
 0x19a   : > { %v569_v3 = vpop.permute.xlu1 %568  ;;  %v589_v4 = vpop.permute.xlu0 %588 }
 0x19b   : > { %v573_v14 = vadd.f32 %v569_v3, %v559_v63  ;;  %v580_v26 = vadd.f32 %v578_v21, %v572_v12  ;;  %v467_v21 = vadd.f32 %v465_v6, %v309_v18  ;;  %v472_v63 = vmul.f32 %v470_v46, %v1981_v0 }
 0x19c   : > { %v450_v6 = vadd.f32 %v448_v41, %v303_v11 }
 0x19d   : > { %v581_v27 = vadd.f32 %v579_v24, %v573_v14  ;;  %v473_v24 = vadd.f32 %v471_v7, %v311_v35  ;;  %v594_v60 = vadd.f32 %v589_v4, %v580_v26  ;;  %v444_v4 = vadd.f32 %v442_v36, %v301_v8 }
 0x19e   : > { %v591_v42 = vpop.permute.xlu1 %590  ;;  %v603_v45 = vpop.permute.xlu0 %602  ;;  %v456_v7 = vadd.f32 %v454_v57, %v305_v16 }
 0x19f   : > { %v608_v3 = vadd.f32 %v603_v45, %v594_v60  ;;  %v595_v48 = vadd.f32 %v591_v42, %v581_v27  ;;  %v486_v60 = vadd.f32 %v484_v2, %v315_v38 }
 0x1a1   : > { %v612_v40 = vmul.f32 %v611_v51, %v608_v3  ;;  %v618_v46 = vmul.f32 %v617_v55, %v608_v3  ;;  %v624_v15 = vmul.f32 %v623_v56, %v608_v3  ;;  %v630_v22 = vmul.f32 %v629_v23, %v608_v3 }
 0x1a2   : > { %v605_v12 = vpop.permute.xlu1 %604  ;;  %v690_v14 = vpop.permute.xlu0 %689  ;;  %v636_v0 = vmul.f32 %v635_v33, %v608_v3  ;;  %v642_v8 = vmul.f32 %v641_v5, %v608_v3  ;;  %v648_v11 = vmul.f32 %v647_v13, %v608_v3  ;;  %v654_v16 = vmul.f32 %v653_v17, %v608_v3 }
 0x1a3   : > { %v2101_v43 = vadd.f32 %v612_v40, %v443_v34  ;;  %v2103_v20 = vadd.f32 %v618_v46, %v449_v25  ;;  %v2105_v26 = vadd.f32 %v624_v15, %v455_v32  ;;  %v2107_v27 = vadd.f32 %v630_v22, %v461_v59 }
 0x1a4   : > { %v2109_v36 = vadd.f32 %v636_v0, %v467_v21  ;;  %v2111_v41 = vadd.f32 %v642_v8, %v473_v24  ;;  %v2113_v57 = vadd.f32 %v648_v11, %v479_v9  ;;  %v2115_v42 = vadd.f32 %v654_v16, %v485_v10 }
 0x1a5   : > { %v462_v25 = vadd.f32 %v460_v31, %v307_v37  ;;  %v468_v32 = vadd.f32 %v466_v61, %v309_v18  ;;  %v474_v59 = vadd.f32 %v472_v63, %v311_v35  ;;  %v609_v21 = vadd.f32 %v605_v12, %v595_v48 }
 0x1a6   : > { %v688_v34 = vpop.permute.xlu1 %687  ;;  %v704_v45 = vpop.permute.xlu0 %703  ;;  %v480_v24 = vadd.f32 %v478_v1, %v313_v30  ;;  %v694_v9 = vadd.f32 %v690_v14, %v2027_v47  ;;  %v713_v3 = vmul.f32 %v712_v29, %v1822_v49  ;;  %v748_v14 = vstv %s2123_s2 }
 0x1a7   : > { %v693_v10 = vadd.f32 %v688_v34, %v2029_v19  ;;  %v613_v37 = vmul.f32 %v611_v51, %v609_v21  ;;  %v619_v18 = vmul.f32 %v617_v55, %v609_v21  ;;  %v625_v35 = vmul.f32 %v623_v56, %v609_v21 }
 0x1a8   : > { %v631_v31 = vmul.f32 %v629_v23, %v609_v21  ;;  %v637_v30 = vmul.f32 %v635_v33, %v609_v21  ;;  %v643_v38 = vmul.f32 %v641_v5, %v609_v21  ;;  %v649_v47 = vmul.f32 %v647_v13, %v609_v21 }
 0x1a9   : > { %v655_v19 = vmul.f32 %v653_v17, %v609_v21  ;;  %v2153_v55 = vadd.f32 %v613_v37, %v444_v4  ;;  %v2155_v56 = vadd.f32 %v619_v18, %v450_v6  ;;  %v2157_v23 = vadd.f32 %v625_v35, %v456_v7 }
 0x1aa   : > { %v702_v61 = vpop.permute.xlu1 %701  ;;  %v724_v51 = vpop.permute.xlu0 %723  ;;  %v2159_v63 = vadd.f32 %v631_v31, %v462_v25  ;;  %v2163_v33 = vadd.f32 %v637_v30, %v468_v32  ;;  %v2165_v5 = vadd.f32 %v643_v38, %v474_v59  ;;  %v2167_v13 = vadd.f32 %v649_v47, %v480_v24 }
 0x1ab   : > { %v2169_v17 = vadd.f32 %v655_v19, %v486_v60  ;;  %v708_v1 = vadd.f32 %v704_v45, %v694_v9  ;;  %v707_v2 = vadd.f32 %v702_v61, %v693_v10  ;;  %v714_v4 = vmul.f32 %v712_v29, %v1829_v52 }
 0x1ac   : > { %v847_v29 = vstv %s2131_s3  ;;  %v749_v0 = vmul.f32 %v748_v14, %v1824_v50  ;;  %v750_v8 = vmul.f32 %v748_v14, %v1832_v53  ;;  %v782_v21 = vstv %s2151_s0  ;;  %s2322_s3 = scalar_lea.hbm %s2392_s5, %s1271_s13  ;;  %s1455_s0 = scalar_lea.vmem %s2324_s17, 2048 }
 0x1ad   : > { %v715_v48 = vadd.f32 %v713_v3, %v707_v2  ;;  %v716_v12 = vadd.f32 %v714_v4, %v708_v1  ;;  %v849_v25 = vmul.f32 %v847_v29, %v1879_v28  ;;  %v848_v32 = vmul.f32 %v847_v29, %v1886_v39  ;;  %p1456_p2 = scmp.ne.s32.totalorder %s2324_s17, %s1455_s0 }
 0x1ae   : > { %v726_v6 = vpop.permute.xlu1 %725  ;;  %v738_v7 = vpop.permute.xlu0 %737  ;;  %v843_v24 = vstv %s2141_s4  ;;  %v788_v60 = vstv %s2161_s1  ;;  %v794_v9 = vstv %s2171_s19  ;;  %v800_v10 = vstv %s2179_s20  ;;  %s1025_s4 = scalar_lea.sflag [#allocation5], %s1731_s10  ;;  %s1544_s1 = smov [#allocation13]  }
 0x1af   : > { %v729_v40 = vadd.f32 %v724_v51, %v715_v48  ;;  %v730_v46 = vadd.f32 %v726_v6, %v716_v12  ;;  %v806_v50 = vstv %s2181_s21  ;;  %v812_v53 = vstv %s2183_s9  ;;  %p1457_p4 = pnand %p1456_p2, %p2432_p5  ;;  %s1459_s19 = sshll.u32 %s1544_s1, 4  ;;  %s1460_s19 = int_to_ptr.vmem [resolvable:$false] %s1459_s19 }
 0x1b0   : > { %v818_v37 = vstv %s2186_s8  ;;  %v824_v18 = vstv %s2188_s6  ;;  %v851_v38 = vadd.f32 %v849_v25, %v843_v24  ;;  %v850_v28 = vadd.f32 %v848_v32, %v843_v24  ;;  %s1461_s20 = scalar_lea.vmem %s1460_s19, 4096  ;;  %p1462_p7 = scmp.lt.s32.totalorder %s2324_s17, %s1460_s19 }
 0x1b1   : > { %v743_v15 = vadd.f32 %v738_v7, %v729_v40  ;;  %p1458_p8 = pneg %p1457_p4  ;;  %p1463_p12 = scmp.lt.s32.totalorder %s1461_s20, %s1455_s0 }
 0x1b2   : > { %v740_v49 = vpop.permute.xlu1 %739  ;;  %v760_v52 = vpop.permute.xlu0 %759 }
 0x1b3   : > { %v744_v22 = vadd.f32 %v740_v49, %v730_v46  ;;  %v751_v11 = vadd.f32 %v749_v0, %v743_v15  ;;  %v883_v15 = vstv %s2201_s26  ;;  %p1464_p10 = por %p1463_p12, %p1462_p7 }
 0x1b4   : > { %v884_v24 = vmul.f32 %v883_v15, %v1893_v44 }
 0x1b5   : > { %v752_v16 = vadd.f32 %v750_v8, %v744_v22  ;;  %v765_v59 = vadd.f32 %v760_v52, %v751_v11  ;;  %p1465_p6 = pnand %p1464_p10, %p1458_p8 }
 0x1b6   : > { %v762_v34 = vpop.permute.xlu1 %761  ;;  %v774_v45 = vpop.permute.xlu0 %773 }
 0x1b7   : > { %v779_v35 = vadd.f32 %v774_v45, %v765_v59  ;;  %v766_v31 = vadd.f32 %v762_v34, %v752_v16 }
 0x1b9   : > { %v783_v19 = vmul.f32 %v782_v21, %v779_v35  ;;  %v789_v39 = vmul.f32 %v788_v60, %v779_v35  ;;  %v795_v61 = vmul.f32 %v794_v9, %v779_v35  ;;  %v801_v51 = vmul.f32 %v800_v10, %v779_v35 }
 0x1ba   : > { %v776_v30 = vpop.permute.xlu1 %775  ;;  %v861_v47 = vpop.permute.xlu0 %860  ;;  %v807_v1 = vmul.f32 %v806_v50, %v779_v35  ;;  %v813_v2 = vmul.f32 %v812_v53, %v779_v35  ;;  %v819_v3 = vmul.f32 %v818_v37, %v779_v35  ;;  %v825_v4 = vmul.f32 %v824_v18, %v779_v35 }
 0x1bb   : > { %v2207_v6 = vadd.f32 %v783_v19, %v2101_v43  ;;  %v2210_v7 = vadd.f32 %v789_v39, %v2103_v20  ;;  %v2213_v48 = vadd.f32 %v795_v61, %v2105_v26  ;;  %v2216_v12 = vadd.f32 %v801_v51, %v2107_v27 }
 0x1bc   : > { %v2219_v14 = vadd.f32 %v807_v1, %v2109_v36  ;;  %v2222_v40 = vadd.f32 %v813_v2, %v2111_v41  ;;  %v2225_v46 = vadd.f32 %v819_v3, %v2113_v57  ;;  %v2228_v43 = vadd.f32 %v825_v4, %v2115_v42 }
 0x1bd   : > { %v780_v52 = vadd.f32 %v776_v30, %v766_v31  ;;  %v865_v26 = vadd.f32 %v861_v47, %v851_v38  ;;  %v953_v19 = vstv %s2233_s11  ;;  %v959_v39 = vstv %s2247_s15 }
 0x1be   : > { %v859_v20 = vpop.permute.xlu1 %858  ;;  %v873_v49 = vpop.permute.xlu0 %872  ;;  %v965_v61 = vstv %s2261_s14  ;;  %v971_v51 = vstv %s2265_s24  ;;  %v977_v1 = vstv %s2267_s29  ;;  %v983_v2 = vstv %s2269_s30 }
 0x1bf   : > { %v864_v29 = vadd.f32 %v859_v20, %v850_v28  ;;  %v784_v27 = vmul.f32 %v782_v21, %v780_v52  ;;  %v790_v36 = vmul.f32 %v788_v60, %v780_v52  ;;  %v796_v22 = vmul.f32 %v794_v9, %v780_v52 }
 0x1c0   : > { %v802_v0 = vmul.f32 %v800_v10, %v780_v52  ;;  %v808_v41 = vmul.f32 %v806_v50, %v780_v52  ;;  %v814_v8 = vmul.f32 %v812_v53, %v780_v52  ;;  %v820_v11 = vmul.f32 %v818_v37, %v780_v52 }
 0x1c1   : > { %v826_v57 = vmul.f32 %v824_v18, %v780_v52  ;;  %v2236_v42 = vadd.f32 %v784_v27, %v2153_v55  ;;  %v2239_v45 = vadd.f32 %v790_v36, %v2155_v56  ;;  %v2242_v25 = vadd.f32 %v796_v22, %v2157_v23 }
 0x1c2   : > { %v875_v16 = vpop.permute.xlu1 %874  ;;  %v895_v34 = vpop.permute.xlu0 %894  ;;  %v2245_v32 = vadd.f32 %v802_v0, %v2159_v63  ;;  %v2250_v59 = vadd.f32 %v808_v41, %v2163_v33  ;;  %v2253_v21 = vadd.f32 %v814_v8, %v2165_v5  ;;  %v2256_v55 = vadd.f32 %v820_v11, %v2167_v13 }
 0x1c3   : > { %v2259_v56 = vadd.f32 %v826_v57, %v2169_v17  ;;  %v878_v23 = vadd.f32 %v873_v49, %v864_v29  ;;  %v879_v63 = vadd.f32 %v875_v16, %v865_v26  ;;  %v885_v60 = vmul.f32 %v883_v15, %v1899_v54 }
 0x1c4   : > { %v919_v17 = vstv %s2231_s7  ;;  %v989_v3 = vstv %s2272_s23  ;;  %v995_v4 = vstv %s2274_s16 }
 0x1c5   : > { %v886_v5 = vadd.f32 %v884_v24, %v878_v23  ;;  %v887_v13 = vadd.f32 %v885_v60, %v879_v63  ;;  %v920_v18 = vmul.f32 %v919_v17, %v1905_v58  ;;  %v921_v35 = vmul.f32 %v919_v17, %v1911_v62 }
 0x1c6   : > { %v897_v33 = vpop.permute.xlu1 %896  ;;  %v909_v9 = vpop.permute.xlu0 %908 }
 0x1c7   : > { %v900_v10 = vadd.f32 %v895_v34, %v886_v5  ;;  %v901_v44 = vadd.f32 %v897_v33, %v887_v13 }
 0x1c9   : > { %v914_v53 = vadd.f32 %v909_v9, %v900_v10 }
 0x1ca   : > { %v911_v54 = vpop.permute.xlu1 %910  ;;  %v931_v50 = vpop.permute.xlu0 %930 }
 0x1cb   : > { %v915_v37 = vadd.f32 %v911_v54, %v901_v44  ;;  %v922_v31 = vadd.f32 %v920_v18, %v914_v53 }
 0x1cd   : > { %v923_v30 = vadd.f32 %v921_v35, %v915_v37  ;;  %v936_v28 = vadd.f32 %v931_v50, %v922_v31 }
 0x1ce   : > { %v933_v38 = vpop.permute.xlu1 %932  ;;  %v945_v47 = vpop.permute.xlu0 %944 }
 0x1cf   : > { %v950_v20 = vadd.f32 %v945_v47, %v936_v28  ;;  %v937_v49 = vadd.f32 %v933_v38, %v923_v30 }
 0x1d1   : > { %v954_v58 = vmul.f32 %v953_v19, %v950_v20  ;;  %v960_v52 = vmul.f32 %v959_v39, %v950_v20  ;;  %v966_v62 = vmul.f32 %v965_v61, %v950_v20  ;;  %v972_v26 = vmul.f32 %v971_v51, %v950_v20 }
 0x1d2   : > { %v978_v29 = vmul.f32 %v977_v1, %v950_v20  ;;  %v984_v15 = vmul.f32 %v983_v2, %v950_v20  ;;  %v990_v27 = vmul.f32 %v989_v3, %v950_v20  ;;  %v996_v36 = vmul.f32 %v995_v4, %v950_v20  ;;  %v947_v22 = vpop.permute.xlu1 %946 }
 0x1d3   : > { %v956_v0 = vadd.f32 %v954_v58, %v2207_v6  ;;  %v962_v41 = vadd.f32 %v960_v52, %v2210_v7  ;;  %v968_v8 = vadd.f32 %v966_v62, %v2213_v48  ;;  %v974_v11 = vadd.f32 %v972_v26, %v2216_v12 }
 0x1d4   : > { %v980_v57 = vadd.f32 %v978_v29, %v2219_v14  ;;  %v986_v16 = vadd.f32 %v984_v15, %v2222_v40  ;;  %v992_v34 = vadd.f32 %v990_v27, %v2225_v46  ;;  %v998_v23 = vadd.f32 %v996_v36, %v2228_v43 }
 0x1d5   : > { %1001 = vst.msk [vmem:[%s2295_s28] sm:$0xff] %vm1000_vm3, %v956_v0  ;;  %1251 = vst.msk [vmem:[%s2295_s28 + $0x10] sm:$0xff] %vm1000_vm3, %v962_v41  ;;  %v951_v6 = vadd.f32 %v947_v22, %v937_v49 }
 0x1d6   : > { %1253 = vst.msk [vmem:[%s2295_s28 + $0x20] sm:$0xff] %vm1000_vm3, %v968_v8  ;;  %1255 = vst.msk [vmem:[%s2295_s28 + $0x30] sm:$0xff] %vm1000_vm3, %v974_v11 }
 0x1d7   : > { %1257 = vst.msk [vmem:[%s2295_s28 + $0x40] sm:$0xff] %vm1000_vm3, %v980_v57  ;;  %1259 = vst.msk [vmem:[%s2295_s28 + $0x50] sm:$0xff] %vm1000_vm3, %v986_v16  ;;  %v955_v7 = vmul.f32 %v953_v19, %v951_v6  ;;  %v961_v48 = vmul.f32 %v959_v39, %v951_v6  ;;  %v967_v12 = vmul.f32 %v965_v61, %v951_v6 }
 0x1d8   : > { %1261 = vst.msk [vmem:[%s2295_s28 + $0x60] sm:$0xff] %vm1000_vm3, %v992_v34  ;;  %1263 = vst.msk [vmem:[%s2295_s28 + $0x70] sm:$0xff] %vm1000_vm3, %v998_v23  ;;  %v973_v14 = vmul.f32 %v971_v51, %v951_v6  ;;  %v979_v40 = vmul.f32 %v977_v1, %v951_v6  ;;  %v985_v46 = vmul.f32 %v983_v2, %v951_v6 }
 0x1d9   : > { %v991_v43 = vmul.f32 %v989_v3, %v951_v6  ;;  %v997_v63 = vmul.f32 %v995_v4, %v951_v6  ;;  %v957_v24 = vadd.f32 %v955_v7, %v2236_v42  ;;  %v963_v60 = vadd.f32 %v961_v48, %v2239_v45 }
 0x1da   : > { %v969_v33 = vadd.f32 %v967_v12, %v2242_v25  ;;  %v975_v9 = vadd.f32 %v973_v14, %v2245_v32  ;;  %v981_v42 = vadd.f32 %v979_v40, %v2250_v59  ;;  %v987_v45 = vadd.f32 %v985_v46, %v2253_v21 }
 0x1db   : > { %v993_v5 = vadd.f32 %v991_v43, %v2256_v55  ;;  %v999_v25 = vadd.f32 %v997_v63, %v2259_v56  ;;  %1002 = vst.msk [vmem:[%s2295_s28 + $0x8] sm:$0xff] %vm1000_vm3, %v957_v24  ;;  %1252 = vst.msk [vmem:[%s2295_s28 + $0x18] sm:$0xff] %vm1000_vm3, %v963_v60 }
 0x1dc   : > { %1254 = vst.msk [vmem:[%s2295_s28 + $0x28] sm:$0xff] %vm1000_vm3, %v969_v33  ;;  %1256 = vst.msk [vmem:[%s2295_s28 + $0x38] sm:$0xff] %vm1000_vm3, %v975_v9 }
 0x1dd   : > { %1258 = vst.msk [vmem:[%s2295_s28 + $0x48] sm:$0xff] %vm1000_vm3, %v981_v42  ;;  %1260 = vst.msk [vmem:[%s2295_s28 + $0x58] sm:$0xff] %vm1000_vm3, %v987_v45 }
 0x1de   : > { %1262 = vst.msk [vmem:[%s2295_s28 + $0x68] sm:$0xff] %vm1000_vm3, %v993_v5  ;;  %1264 = vst.msk [vmem:[%s2295_s28 + $0x78] sm:$0xff] %vm1000_vm3, %v999_v25 }
 0x1df   : > { %1468 = shalt.err (!%p1465_p6)
}
 0x1e0   : > { %s1469_s21 = scalar_lea.hbm %s2322_s3, 2048  ;;  %s1473_s6 = scalar_lea.hbm %s2392_s5, 4096 }
 0x1e1   : > { %p1470_p0 = scmp.ne.s32.totalorder %s2322_s3, %s1469_s21  ;;  %p1474_p3 = scmp.lt.s32.totalorder %s2322_s3, %s2392_s5 }
 0x1e2   : > { %p1475_p13 = scmp.lt.s32.totalorder %s1473_s6, %s1469_s21 }
 0x1e3   : > { %p1471_p11 = pnand %p1470_p0, %p2432_p5 }
 0x1e4   : > { %p1476_p1 = por %p1475_p13, %p1474_p3 }
 0x1e5   : > { %p1472_p9 = pneg %p1471_p11 }
 0x1e7   : > { %p1477_p2 = pnand %p1476_p1, %p1472_p9 }
 0x1e9   : > { %1480 = shalt.err (!%p1477_p2)
}
 0x1ea   : > { %s1545_s11 = smov 128   ;;  %s1546_s15 = smov 8  }
 0x1eb   : > { %1290 = dma.vmem_to_hbm [thread:$0]  (%p2432_p5), %s2324_s17, 2048, %s2322_s3, %s1025_s4, %s1545_s11, %s1545_s11, %s1546_s15  }
 0x1ec PF: > { %s2433_s14 = sld [smem:[#allocation21_spill]]  ;;  %s1053_s24 = sand.u32 1, %s1519_s18  }
 0x1ed   : > { %p2434_p4 = scmp.ne.s32.totalorder %s2411_s25, 0  ;;  %s1054_s29 = scalar_lea.sflag [#allocation5], %s1053_s24 }
 0x1f2   : > { %p2435_p8 = scmp.ge.s32.totalorder %s2433_s14, 2 }
 0x1f4   : > { %p1310_p7 = pnand %p2435_p8, %p2434_p4 }
 0x1f6   : > { %p1311_p12 = pneg %p1310_p7 }
 0x1f8   : > { %1514 = dma.done.wait (%p1311_p12), %s1054_s29, 2048  }
 0x1f9   : > { %1516 = vsyncadd (%p1311_p12), %s1054_s29, 4294965248  ;;  %s2436_s21 = sld [smem:[#allocation22_spill]] }
 0x1fa   : > { %s2437_s18 = sld [smem:[#allocation19_spill]] }
 0x1fb   : > { %s2438_s19 = sld [smem:[#allocation20_spill]] }
 0x1fc   : > { %s2439_s20 = sld [smem:[#allocation23_spill]] }
 0x1ff   : > { %p21_p10 = scmp.ge.s32.totalorder %s2436_s21, 4  }
 0x201   :  { %23 = sbr.rel (!%p21_p10) target bundleno = 14 (0xe), region = 112 }
 0x206   :  { %1059 = vsyncpa [#allocation4], 1 }
 0x207   :  { %1061 = vsyncpa [#allocation4 + $0x1], 1 }
 0x208   :  { %1062 = vsyncpa [#allocation5], 1 }
 0x209   :  { %1064 = vsyncpa [#allocation5 + $0x1], 1 }
 0x20a   :  { %1065 = vsyncpa [#allocation6], 1 }
 0x20b   :  { %1067 = vsyncpa [#allocation6 + $0x1], 1 }
 0x20c   :  { %1068 = vsyncpa [#allocation9], 1 }
 0x20d   :  { %1069 = vsyncpa [#allocation12], 1 }

</bundles_post_ra>
